<compile_context>
chip_gen: v7x
topology: tpu7x:2x2x1
jax: 0.10.0
libtpu: 0.0.40
codegen_flags: <defaults>
</compile_context>

<pallas_src>
import math

import numpy as np
import jax
import jax.numpy as jnp
from jax.experimental import pallas as pl
from jax.experimental.pallas import tpu as pltpu


def embed_kernel(x_ref, scale_ref, shift_ref, w1_ref, w2_ref, o_ref):
    # x_ref:       (B, C, tn)   NCHW slab (channels on sublanes, J*T on lanes)
    # scale/shift: (C, tn)      folded BatchNorm affine
    # w1_ref:      (H, C)       first 1x1 conv weight
    # w2_ref:      (D1, H)      second 1x1 conv weight
    # o_ref:       (B, D1, tn)  output block, already in NCHW layout
    w1 = w1_ref[...]
    w2 = w2_ref[...]
    scale = scale_ref[...]
    shift = shift_ref[...]
    # Static unroll over the (small) batch: each iteration is two plain 2-D
    # MXU matmuls, no batched-dot transposes.
    for b in range(x_ref.shape[0]):
        xn = x_ref[b] * scale + shift
        h = jnp.dot(w1, xn,
                    preferred_element_type=jnp.float32,
                    precision=jax.lax.Precision.HIGHEST)
        h = jnp.maximum(h, 0.0)
        y = jnp.dot(w2, h,
                    preferred_element_type=jnp.float32,
                    precision=jax.lax.Precision.HIGHEST)
        o_ref[b] = jnp.maximum(y, 0.0).astype(o_ref.dtype)


def embed_forward(x, bn_gamma, bn_beta, bn_mean, bn_var, w1, w2, *, eps=1e-5):
    """x: (B, C, J, T) NCHW float32.  Returns (B, dim1, J, T) float32."""
    B, C, J, T = x.shape
    H = w1.shape[0]            # 64
    D1 = w2.shape[0]           # dim1
    JT = J * T
    LANE = 128

    # ---- BatchNorm1d(C*J) folded into per-(c, j) affine (inference mode) ----
    inv_std = bn_gamma / jnp.sqrt(bn_var + eps)
    scale_cj = inv_std.reshape(C, J)                         # (C, J)
    shift_cj = (bn_beta - bn_mean * inv_std).reshape(C, J)   # (C, J)
    scale_flat = jnp.broadcast_to(scale_cj[:, :, None], (C, J, T)).reshape(C, JT)
    shift_flat = jnp.broadcast_to(shift_cj[:, :, None], (C, J, T)).reshape(C, JT)

    # NCHW with the trailing joint*time axes merged — free reshape, no transpose
    x3 = x.reshape(B, C, JT)

    # Conv2d 1x1 weights (out, in, 1, 1) -> (out, in) matmul operands
    w1m = w1.reshape(H, C)     # (H, C)
    w2m = w2.reshape(D1, H)    # (D1, H)

    # ---- lane-tile sizing ----
    # Budget ~8 MiB for the double-buffered (B, D1, tn) f32 output tile so the
    # kernel stays inside v5e's 16 MiB / v7x's 32 MiB default scoped VMEM with
    # headroom for the in-kernel f32 temps (h/y slabs).
    out_row_bytes = B * D1 * 4
    tn_cap = max(LANE, ((8 << 20) // (2 * out_row_bytes)) // LANE * LANE)

    jt_lanes = pl.cdiv(JT, LANE)                 # J*T in units of 128 lanes
    n_jt = pl.cdiv(jt_lanes * LANE, tn_cap)      # min #blocks under the VMEM cap
    if jt_lanes >= 2:
        n_jt = max(n_jt, 2)                      # >=2 parallel blocks for v7x's 2 TCs
    tn = pl.cdiv(jt_lanes, n_jt) * LANE          # lane-dense tile (multiple of 128)
    n_jt = pl.cdiv(jt_lanes * LANE, tn)
    JT_pad = n_jt * tn                           # pad so every block is full

    if JT_pad != JT:
        pad = JT_pad - JT
        x3 = jnp.pad(x3, ((0, 0), (0, 0), (0, pad)))
        scale_flat = jnp.pad(scale_flat, ((0, 0), (0, pad)))
        shift_flat = jnp.pad(shift_flat, ((0, 0), (0, pad)))

    out3 = pl.pallas_call(
        embed_kernel,
        out_shape=jax.ShapeDtypeStruct((B, D1, JT_pad), jnp.float32),
        grid_spec=pltpu.PrefetchScalarGridSpec(
            num_scalar_prefetch=0,
            grid=(n_jt,),
            in_specs=[
                pl.BlockSpec((B, C, tn), lambda n: (0, 0, n)),  # x slab (all batches)
                pl.BlockSpec((C, tn), lambda n: (0, n)),        # BN scale
                pl.BlockSpec((C, tn), lambda n: (0, n)),        # BN shift
                pl.BlockSpec((H, C), lambda n: (0, 0)),         # W1 (resident)
                pl.BlockSpec((D1, H), lambda n: (0, 0)),        # W2 (resident)
            ],
            out_specs=pl.BlockSpec((B, D1, tn), lambda n: (0, 0, n)),
        ),
        compiler_params=pltpu.CompilerParams(
            dimension_semantics=("parallel",)),
    )(x3, scale_flat, shift_flat, w1m, w2m)

    if JT_pad != JT:
        out3 = out3[:, :, :JT]
    # (B, D1, J*T) -> (B, D1, J, T): contiguous split of the last dim, free.
    return out3.reshape(B, D1, J, T)


if __name__ == "__main__":
    # embed(dim=3, dim1=128, norm=True, bias=False); num_joints must be 25
    B, C, J, T = 2, 3, 25, 8
    H, D1 = 64, 128

    key = jax.random.PRNGKey(0)
    ks = jax.random.split(key, 7)
    x = jax.random.normal(ks[0], (B, C, J, T), dtype=jnp.float32)

    # deterministic synthetic parameters (shapes from __init__)
    bn_gamma = 1.0 + 0.1 * jax.random.normal(ks[1], (C * J,), dtype=jnp.float32)
    bn_beta = 0.1 * jax.random.normal(ks[2], (C * J,), dtype=jnp.float32)
    bn_mean = 0.1 * jax.random.normal(ks[3], (C * J,), dtype=jnp.float32)
    bn_var = jnp.abs(jax.random.normal(ks[4], (C * J,), dtype=jnp.float32)) + 0.5
    w1 = jax.random.normal(ks[5], (H, C, 1, 1), dtype=jnp.float32) / math.sqrt(C)
    w2 = jax.random.normal(ks[6], (D1, H, 1, 1), dtype=jnp.float32) / math.sqrt(H)

    out = embed_forward(x, bn_gamma, bn_beta, bn_mean, bn_var, w1, w2)
    out = jax.block_until_ready(out)
    assert out.shape == (B, D1, J, T) and out.dtype == jnp.float32

    # pure-JAX reference (mirrors the PyTorch forward, inference-mode BN)
    eps = 1e-5
    xf = x.reshape(B, C * J, T)
    xn = (xf - bn_mean[None, :, None]) / jnp.sqrt(bn_var[None, :, None] + eps)
    xn = xn * bn_gamma[None, :, None] + bn_beta[None, :, None]
    xn = xn.reshape(B, C, J, T)
    h_ref = jnp.maximum(
        jnp.einsum("oc,bcjt->bojt", w1.reshape(H, C), xn,
                   precision=jax.lax.Precision.HIGHEST), 0.0)
    ref = jnp.maximum(
        jnp.einsum("po,bojt->bpjt", w2.reshape(D1, H), h_ref,
                   precision=jax.lax.Precision.HIGHEST), 0.0)
    np.testing.assert_allclose(np.asarray(out), np.asarray(ref),
                               rtol=1e-4, atol=1e-4)

    print("KERNEL_OK")
</pallas_src>

<mosaic_0001>
module attributes {stable_mosaic.version = 11 : i64} {
  func.func @embed_kernel(%arg0: i32, %arg1: memref<2x3x128xf32, #tpu.memory_space<vmem>>, %arg2: memref<3x128xf32, #tpu.memory_space<vmem>>, %arg3: memref<3x128xf32, #tpu.memory_space<vmem>>, %arg4: memref<64x3xf32, #tpu.memory_space<vmem>>, %arg5: memref<128x64xf32, #tpu.memory_space<vmem>>, %arg6: memref<2x128x128xf32, #tpu.memory_space<vmem>>) attributes {dimension_semantics = [#tpu.dimension_semantics<parallel>], iteration_bounds = array<i64: 2>, scalar_prefetch = 0 : i64, scratch_operands = 0 : i64, tpu.core_type = #tpu.core_type<tc>, window_params = [{transform_indices = @transform_0, window_bounds = array<i64: 2, 3, 128>}, {transform_indices = @transform_1, window_bounds = array<i64: 3, 128>}, {transform_indices = @transform_2, window_bounds = array<i64: 3, 128>}, {pipeline_mode = #tpu.pipeline_mode<synchronous>, transform_indices = @transform_3, window_bounds = array<i64: 64, 3>}, {pipeline_mode = #tpu.pipeline_mode<synchronous>, transform_indices = @transform_4, window_bounds = array<i64: 128, 64>}, {transform_indices = @transform_5, window_bounds = array<i64: 2, 128, 128>}]} {
    %c0 = arith.constant 0 : index
    %c0_0 = arith.constant 0 : index
    %0 = vector.load %arg4[%c0, %c0_0] : memref<64x3xf32, #tpu.memory_space<vmem>>, vector<64x3xf32>
    %c0_1 = arith.constant 0 : index
    %c0_2 = arith.constant 0 : index
    %1 = vector.load %arg5[%c0_1, %c0_2] : memref<128x64xf32, #tpu.memory_space<vmem>>, vector<128x64xf32>
    %c0_3 = arith.constant 0 : index
    %c0_4 = arith.constant 0 : index
    %2 = vector.load %arg2[%c0_3, %c0_4] : memref<3x128xf32, #tpu.memory_space<vmem>>, vector<3x128xf32>
    %c0_5 = arith.constant 0 : index
    %c0_6 = arith.constant 0 : index
    %3 = vector.load %arg3[%c0_5, %c0_6] : memref<3x128xf32, #tpu.memory_space<vmem>>, vector<3x128xf32>
    %c0_7 = arith.constant 0 : index
    %c0_8 = arith.constant 0 : index
    %c0_9 = arith.constant 0 : index
    %4 = vector.load %arg1[%c0_7, %c0_8, %c0_9] : memref<2x3x128xf32, #tpu.memory_space<vmem>>, vector<1x3x128xf32>
    %5 = vector.shape_cast %4 : vector<1x3x128xf32> to vector<3x128xf32>
    %6 = arith.mulf %5, %2 : vector<3x128xf32>
    %7 = arith.addf %6, %3 : vector<3x128xf32>
    %cst = arith.constant dense<0.000000e+00> : vector<64x128xf32>
    %8 = tpu.matmul %0, %7, %cst {dimension_numbers = #tpu.dot_dimension_numbers<[1], [0], [0], [1], [0, 0, 1, 1], [], []>, precision = #tpu.contract_precision<fp32>} : vector<64x3xf32>, vector<3x128xf32>, vector<64x128xf32> -> vector<64x128xf32>
    %cst_10 = arith.constant 0.000000e+00 : f32
    %9 = vector.broadcast %cst_10 : f32 to vector<64x128xf32>
    %10 = arith.maximumf %8, %9 : vector<64x128xf32>
    %cst_11 = arith.constant dense<0.000000e+00> : vector<128x128xf32>
    %11 = tpu.matmul %1, %10, %cst_11 {dimension_numbers = #tpu.dot_dimension_numbers<[1], [0], [0], [1], [0, 0, 1, 1], [], []>, precision = #tpu.contract_precision<fp32>} : vector<128x64xf32>, vector<64x128xf32>, vector<128x128xf32> -> vector<128x128xf32>
    %cst_12 = arith.constant 0.000000e+00 : f32
    %12 = vector.broadcast %cst_12 : f32 to vector<128x128xf32>
    %13 = arith.maximumf %11, %12 : vector<128x128xf32>
    %c0_13 = arith.constant 0 : index
    %c0_14 = arith.constant 0 : index
    %c0_15 = arith.constant 0 : index
    %14 = vector.load %arg6[%c0_13, %c0_14, %c0_15] : memref<2x128x128xf32, #tpu.memory_space<vmem>>, vector<1x128x128xf32>
    %15 = vector.shape_cast %14 : vector<1x128x128xf32> to vector<128x128xf32>
    %16 = vector.shape_cast %13 : vector<128x128xf32> to vector<1x128x128xf32>
    tpu.vector_store %arg6[%c0_13, %c0_14, %c0_15], %16 {strides = array<i32>} : memref<2x128x128xf32, #tpu.memory_space<vmem>>, vector<1x128x128xf32>,
    %c1 = arith.constant 1 : index
    %c0_16 = arith.constant 0 : index
    %c0_17 = arith.constant 0 : index
    %17 = vector.load %arg1[%c1, %c0_16, %c0_17] : memref<2x3x128xf32, #tpu.memory_space<vmem>>, vector<1x3x128xf32>
    %18 = vector.shape_cast %17 : vector<1x3x128xf32> to vector<3x128xf32>
    %19 = arith.mulf %18, %2 : vector<3x128xf32>
    %20 = arith.addf %19, %3 : vector<3x128xf32>
    %cst_18 = arith.constant dense<0.000000e+00> : vector<64x128xf32>
    %21 = tpu.matmul %0, %20, %cst_18 {dimension_numbers = #tpu.dot_dimension_numbers<[1], [0], [0], [1], [0, 0, 1, 1], [], []>, precision = #tpu.contract_precision<fp32>} : vector<64x3xf32>, vector<3x128xf32>, vector<64x128xf32> -> vector<64x128xf32>
    %cst_19 = arith.constant 0.000000e+00 : f32
    %22 = vector.broadcast %cst_19 : f32 to vector<64x128xf32>
    %23 = arith.maximumf %21, %22 : vector<64x128xf32>
    %cst_20 = arith.constant dense<0.000000e+00> : vector<128x128xf32>
    %24 = tpu.matmul %1, %23, %cst_20 {dimension_numbers = #tpu.dot_dimension_numbers<[1], [0], [0], [1], [0, 0, 1, 1], [], []>, precision = #tpu.contract_precision<fp32>} : vector<128x64xf32>, vector<64x128xf32>, vector<128x128xf32> -> vector<128x128xf32>
    %cst_21 = arith.constant 0.000000e+00 : f32
    %25 = vector.broadcast %cst_21 : f32 to vector<128x128xf32>
    %26 = arith.maximumf %24, %25 : vector<128x128xf32>
    %c1_22 = arith.constant 1 : index
    %c0_23 = arith.constant 0 : index
    %c0_24 = arith.constant 0 : index
    %27 = vector.load %arg6[%c1_22, %c0_23, %c0_24] : memref<2x128x128xf32, #tpu.memory_space<vmem>>, vector<1x128x128xf32>
    %28 = vector.shape_cast %27 : vector<1x128x128xf32> to vector<128x128xf32>
    %29 = vector.shape_cast %26 : vector<128x128xf32> to vector<1x128x128xf32>
    tpu.vector_store %arg6[%c1_22, %c0_23, %c0_24], %29 {strides = array<i32>} : memref<2x128x128xf32, #tpu.memory_space<vmem>>, vector<1x128x128xf32>,
    return
  }
  func.func @transform_0(%arg0: i32) -> (i32, i32, i32) {
    %c0_i32 = arith.constant 0 : i32
    %c0_i32_0 = arith.constant 0 : i32
    %c0_i32_1 = arith.constant 0 : i32
    return %c0_i32, %c0_i32_0, %arg0 : i32, i32, i32
  }
  func.func @transform_1(%arg0: i32) -> (i32, i32) {
    %c0_i32 = arith.constant 0 : i32
    %c0_i32_0 = arith.constant 0 : i32
    return %c0_i32, %arg0 : i32, i32
  }
  func.func @transform_2(%arg0: i32) -> (i32, i32) {
    %c0_i32 = arith.constant 0 : i32
    %c0_i32_0 = arith.constant 0 : i32
    return %c0_i32, %arg0 : i32, i32
  }
  func.func @transform_3(%arg0: i32) -> (i32, i32) {
    %c0_i32 = arith.constant 0 : i32
    %c0_i32_0 = arith.constant 0 : i32
    %c0_i32_1 = arith.constant 0 : i32
    return %c0_i32, %c0_i32_0 : i32, i32
  }
  func.func @transform_4(%arg0: i32) -> (i32, i32) {
    %c0_i32 = arith.constant 0 : i32
    %c0_i32_0 = arith.constant 0 : i32
    %c0_i32_1 = arith.constant 0 : i32
    return %c0_i32, %c0_i32_0 : i32, i32
  }
  func.func @transform_5(%arg0: i32) -> (i32, i32, i32) {
    %c0_i32 = arith.constant 0 : i32
    %c0_i32_0 = arith.constant 0 : i32
    %c0_i32_1 = arith.constant 0 : i32
    return %c0_i32, %c0_i32_0, %arg0 : i32, i32, i32
  }
}

</mosaic_0001>

<bundles_post_ra>
// kernel: tpu_custom_call.1
= control target key start
LH: loop header
LB: loop body
LE: loop exit
PB: predicated region body
PF: predicated region fallthrough
CT: control target
= control target key end

     0   :  { %10 = vsyncpa [#allocation4], 0  ;;  %s7108_s0 = inlined_call_operand.vmem [shape: f32[2,3,256], index: 0, kind: input, shape index: {}]   ;;  %s7109_s1 = inlined_call_operand.vmem [shape: f32[3,256], index: 1, kind: input, shape index: {}]   ;;  %s7110_s2 = inlined_call_operand.vmem [shape: f32[3,256], index: 2, kind: input, shape index: {}]   ;;  %s7111_s3 = inlined_call_operand.vmem [shape: f32[64,3], index: 3, kind: input, shape index: {}]   ;;  %s7112_s4 = inlined_call_operand.vmem [shape: f32[128,64], index: 4, kind: input, shape index: {}]   ;;  %s7113_s5 = inlined_call_operand.hbm [shape: f32[2,128,256], index: 5, kind: output, shape index: {}]  }
   0x1   :  { %12 = vsyncpa [#allocation4 + $0x1], 0  ;;  %s6115_s18 = smov 0   ;;  %s6117_s19 = smov 0  }
   0x2   :  { %s6119_s20 = smov 0   ;;  %s6121_s21 = smov 0  }
   0x3 LB: > { %s6136_s22 = sadd.s32 4294967295, %s6079_s21   ;;  %s4460_s23 = sadd.s32 4294967294, %s6079_s21   ;;  %s6079_s21 = sphi %s6121_s21, %s7246_s21   ;;  %s6075_s20 = sphi %s6119_s20, %s7245_s20   ;;  %s6071_s19 = sphi %s6117_s19, %s7244_s19   ;;  %s6067_s18 = sphi %s6115_s18, %s7243_s18  }
   0x4   : > { %s6140_s24 = sadd.s32 1, %s6079_s21   ;;  %s25_s25 = sadd.s32 1, %s6075_s20 }
   0x5   : > { %s22_s26 = ssub.s32 %s6079_s21, %s6140_s24  ;;  %p32_p0 = scmp.ne.s32.totalorder %s6075_s20, %s6071_s19 }
   0x6   : > { %p23_p1 = scmp.eq.s32.totalorder %s22_s26, 0  ;;  %p33_p2 = scmp.eq.s32.totalorder %s6079_s21, 0 }
   0x7   : > { %p156_p3 = scmp.eq.s32.totalorder %s6136_s22, 1  ;;  %p161_p4 = scmp.ne.s32.totalorder %s6071_s19, %s6067_s18 }
   0x8   : > { %s6152_s27 = scalar_select %p23_p1, %s6075_s20, %s25_s25  }
   0x9   : > { %p34_p5 = por %p33_p2, %p32_p0  ;;  %p6154_p6 = por %p156_p3, %p32_p0 }
   0xa   : > { %p162_p7 = scmp.eq.s32.totalorder %s4460_s23, 1  ;;  %p4462_p9 = scmp.ge.s32.totalorder %s6079_s21, 2 }
   0xc   : > { %p6158_p8 = por %p162_p7, %p161_p4  ;;  %184 = sbr.rel (%p4462_p9) target bundleno = 26 (0x1a), region = 24 }
  0x13   : > { %187 = sbr.rel (!%p34_p5) target bundleno = 26 (0x1a), region = 28  ;;  %s189_s30 = sand.u32 (%p34_p5), 1, %s6075_s20  }
  0x14   : > { %s4464_s6 = sshll.u32 (%p34_p5), %s6079_s21, 2  ;;  %s4463_s7 = sshll.u32 (%p34_p5), %s189_s30, 3 }
  0x15   : > { %s193_s10 = scalar_lea.vmem (%p34_p5), %s7108_s0, %s4464_s6  ;;  %s191_s11 = scalar_lea.vmem (%p34_p5), [#allocation2], %s4463_s7 }
  0x16   : > { %v209_v0 = vld [vmem:[%s193_s10] sm:$0xf] (%p34_p5)  ;;  %v211_v1 = vld [vmem:[%s193_s10 + $0x8] sm:$0xf] (%p34_p5) }
  0x17   : > { %210 = vst [vmem:[%s191_s11] sm:$0xf] (%p34_p5), %v209_v0  ;;  %212 = vst [vmem:[%s191_s11 + $0x4] sm:$0xf] (%p34_p5), %v211_v1 }
  0x1a PF: > { %p4465_p10 = scmp.ge.s32.totalorder %s6079_s21, 1  ;;  %p252_p11 = scmp.lt.s32.totalorder %s6079_s21, 3 }
  0x1c   : > { %p253_p12 = pnand %p4465_p10, %p252_p11 }
  0x1e   : > { %256 = sbr.rel (%p253_p12) target bundleno = 877 (0x36d), region = 77 }
  0x25   : > { %s6173_s12 = sand.u32 1, %s6071_s19   ;;  %p294_p13 = scmp.lt.s32.totalorder %s6136_s22, 1  ;;  %v302_v2 = vld [vmem:[%s7111_s3] sm:$0xff]  ;;  %vm331_vm0 = vcmask 23552   ;;  %v303_v3 = vld [vmem:[%s7111_s3 + $0x8] sm:$0xff]  ;;  %v304_v6 = vld [vmem:[%s7111_s3 + $0x10] sm:$0xff] }
  0x26   : > { %s4466_s17 = sshll.u32 %s6173_s12, 3  ;;  %v333_v4 = vsel %vm331_vm0, %v302_v2, 0  ;;  %v336_v5 = vsel %vm331_vm0, %v303_v3, 0  ;;  %v305_v7 = vld [vmem:[%s7111_s3 + $0x18] sm:$0xff]  ;;  %v339_v10 = vsel %vm331_vm0, %v304_v6, 0  ;;  %v306_v14 = vld [vmem:[%s7111_s3 + $0x20] sm:$0xff] }
  0x27   : > { %v6191_v8 = vand.u32 4294901760, %v333_v4  ;;  %v6193_v9 = vand.u32 4294901760, %v336_v5  ;;  %v342_v11 = vsel %vm331_vm0, %v305_v7, 0  ;;  %s295_s6 = scalar_select %p294_p13, %s6136_s22, 1  ;;  %v6198_v12 = vand.u32 4294901760, %v339_v10  ;;  %v307_v18 = vld [vmem:[%s7111_s3 + $0x28] sm:$0xff] }
  0x28   : > { %v6200_v13 = vand.u32 4294901760, %v342_v11  ;;  %v345_v17 = vsel %vm331_vm0, %v306_v14, 0  ;;  %v308_v19 = vld [vmem:[%s7111_s3 + $0x30] sm:$0xff]  ;;  %s261_s15 = scalar_lea.vmem [#allocation2], %s4466_s17  ;;  %v348_v24 = vsel %vm331_vm0, %v307_v18, 0  ;;  %vm356_vm1 = vcmask 1042432  }
  0x29   : > { %v6206_v15 = vsub.f32 %v333_v4, %v6191_v8  ;;  %v6209_v16 = vsub.f32 %v336_v5, %v6193_v9  ;;  %s4468_s14 = sshll.u32 %s295_s6, 2  ;;  %v328_v20 = vld [vmem:[%s261_s15] sm:$0x7]  ;;  %v6219_v21 = vsub.f32 %v339_v10, %v6198_v12  ;;  %v6224_v23 = vand.u32 4294901760, %v345_v17  ;;  %v4470_v40 = vld [vmem:[%s261_s15 + $0x4] sm:$0x7] }
  0x2a   : > { %v6222_v22 = vsub.f32 %v342_v11, %v6200_v13  ;;  %s297_s25 = scalar_lea.vmem %s7109_s1, %s4468_s14  ;;  %s301_s6 = scalar_lea.vmem %s7110_s2, %s4468_s14  ;;  %v6239_v27 = vand.u32 4294901760, %v348_v24  ;;  %v351_v28 = vsel %vm331_vm0, %v308_v19, 0  ;;  %v309_v39 = vld [vmem:[%s7111_s3 + $0x38] sm:$0xff]  ;;  %vm1115_vm2 = vcmask 523264  }
  0x2b   : > { %v6234_v25 = vand.u32 4294901760, %v6206_v15  ;;  %v6237_v26 = vand.u32 4294901760, %v6209_v16  ;;  %v326_v29 = vld [vmem:[%s297_s25] sm:$0x7]  ;;  %v6243_v31 = vand.u32 4294901760, %v6219_v21  ;;  %v6246_v32 = vsub.f32 %v345_v17, %v6224_v23  ;;  %s4467_s10 = sshll.u32 %s6173_s12, 8 }
  0x2c   : > { %v327_v30 = vld [vmem:[%s301_s6] sm:$0x7]  ;;  %v329_v33 = vmul.f32 %v328_v20, %v326_v29  ;;  %v6251_v35 = vand.u32 4294901760, %v6222_v22  ;;  %v6256_v37 = vsub.f32 %v348_v24, %v6239_v27  ;;  %v6258_v38 = vand.u32 4294901760, %v351_v28  ;;  %s7017_s11 = scalar_lea.vmem [#allocation3], %s4467_s10  ;;  %s4488_s13 = sshll.u32 %s6136_s22, 7 }
  0x2d   : > { %v429_v34 = vsub.f32 %v6206_v15, %v6234_v25  ;;  %v439_v36 = vsub.f32 %v6209_v16, %v6237_v26  ;;  %v449_v43 = vsub.f32 %v6219_v21, %v6243_v31  ;;  %v6268_v44 = vand.u32 4294901760, %v6246_v32  ;;  %s4368_s14 = sshll.u32 %s7017_s11, 4  ;;  %s7060_s23 = scalar_lea.hbm %s7113_s5, %s4488_s13  ;;  %s7062_s14 = int_to_ptr.vmem [resolvable:$true] %s4368_s14 }
  0x2e   : > { %v330_v41 = vadd.f32 %v329_v33, %v327_v30  ;;  %v6271_v45 = vsub.f32 %v351_v28, %v6258_v38  ;;  %v459_v47 = vsub.f32 %v6222_v22, %v6251_v35  ;;  %v354_v48 = vsel %vm331_vm0, %v309_v39, 0  ;;  %s4356_s22 = scalar_lea.sflag [#allocation4], %s6173_s12  ;;  %s6017_s25 = scalar_lea.vmem %s7062_s14, 4096 }
  0x2f   : > { %v6263_v42 = vand.u32 4294901760, %v429_v34  ;;  %v2380_v49 = vmul.f32 %v4470_v40, %v326_v29  ;;  %v6280_v51 = vand.u32 4294901760, %v439_v36  ;;  %v6283_v52 = vand.u32 4294901760, %v6256_v37  ;;  %v315_v34 = vld [vmem:[%s7112_s4 + $0x28] sm:$0xff]  ;;  %v316_v36 = vld [vmem:[%s7112_s4 + $0x30] sm:$0xff]  ;;  %p6018_p0 = scmp.ne.s32.totalorder %s7062_s14, %s6017_s25  ;;  %s6081_s26 = smov [#allocation3]  }
  0x30   : > { %v358_v46 = vsel %vm356_vm1, %v330_v41, 0  ;;  %v6285_v53 = vand.u32 4294901760, %v354_v48  ;;  %v6287_v54 = vand.u32 4294901760, %v449_v43  ;;  %v469_v55 = vsub.f32 %v6246_v32, %v6268_v44  ;;  %v317_v43 = vld [vmem:[%s7112_s4 + $0x38] sm:$0xff]  ;;  %s6021_s30 = sshll.u32 %s6081_s26, 4  ;;  %s6022_s30 = int_to_ptr.vmem [resolvable:$false] %s6021_s30 }
  0x31   : > { %4889 = vmatprep.mubr.f32.mxu0 %v6263_v42  ;;  %v6278_v50 = vand.u32 4294901760, %v358_v46  ;;  %v6292_v56 = vand.u32 4294901760, %v6271_v45  ;;  %v2381_v57 = vadd.f32 %v2380_v49, %v327_v30  ;;  %v6302_v61 = vand.u32 4294901760, %v459_v47  ;;  %v314_v30 = vld [vmem:[%s7112_s4 + $0x20] sm:$0xff]  ;;  %p6019_p1 = pnand %p6018_p0, %p6154_p6  ;;  %s6023_s6 = scalar_lea.vmem %s6022_s30, 8192 }
  0x32   : > { %v6297_v59 = vsub.f32 %v354_v48, %v6285_v53  ;;  %v479_v63 = vsub.f32 %v6256_v37, %v6283_v52  ;;  %v6310_v1 = vand.u32 4294901760, %v469_v55  ;;  %v1132_v39 = vsel %vm1115_vm2, %v315_v34, 0  ;;  %p6024_p3 = scmp.lt.s32.totalorder %s7062_s14, %s6022_s30  ;;  %p6025_p4 = scmp.lt.s32.totalorder %s6023_s6, %s6017_s25 }
  0x33   : > { %4887 = vmatprep.subr.mxu0 %v6278_v50  ;;  %v508_v58 = vsub.f32 %v358_v46, %v6278_v50  ;;  %v2383_v60 = vsel %vm356_vm1, %v2381_v57, 0  ;;  %v489_v2 = vsub.f32 %v6271_v45, %v6292_v56  ;;  %v1138_v49 = vsel %vm1115_vm2, %v317_v43, 0  ;;  %p6020_p2 = pneg %p6019_p1 }
  0x34   : > { %4888 = vmatpush3.msra.mxu0 %v6278_v50  ;;  %v6307_v0 = vand.u32 4294901760, %v6297_v59  ;;  %v6315_v5 = vand.u32 4294901760, %v479_v63  ;;  %v6355_v11 = vand.u32 4294901760, %v2383_v60  ;;  %v6516_v57 = vand.u32 4294901760, %v1138_v49  ;;  %p6026_p5 = por %p6025_p4, %p6024_p3 }
  0x35   : > { %4890 = vmatmul.mubr.f32.vlgmr.msra.gmra.mrb[0].mxu0 %v6280_v51  ;;  %v509_v62 = vand.u32 4294901760, %v508_v58  ;;  %v6320_v7 = vand.u32 4294901760, %v489_v2 }
  0x36   : > { %4892 = vmatprep.mubr.f32.mxu0 %v6287_v54  ;;  %v499_v6 = vsub.f32 %v6297_v59, %v6307_v0  ;;  %v2533_v14 = vsub.f32 %v2383_v60, %v6355_v11  ;;  %7175 = vst [vmem:[#allocation10_spill] sm:$0xff] %v6516_v57  ;;  %p6027_p7 = pnand %p6026_p5, %p6020_p2 }
  0x37   : > { %v510_v3 = vsub.f32 %v508_v58, %v509_v62 }
  0x38   : > { %v6323_v10 = vand.u32 4294901760, %v499_v6  ;;  %v2534_v17 = vand.u32 4294901760, %v2533_v14 }
  0x39   : > { %4893 = vmatmul.mubr.f32.gmra.mrb[2].mxu0 %v6302_v61  ;;  %v511_v4 = vand.u32 4294901760, %v510_v3 }
  0x3a   : > { %4895 = vmatprep.mubr.f32.mxu0 %v6310_v1  ;;  %v2535_v18 = vsub.f32 %v2533_v14, %v2534_v17 }
  0x3b   : > { %4901 = vmatprep.subr.mxu0 %v511_v4 }
  0x3c   : > { %4902 = vmatpush3.msra.mxu0 %v511_v4  ;;  %v2536_v19 = vand.u32 4294901760, %v2535_v18  ;;  %v6542_v18 = vsub.f32 %v1138_v49, %v6516_v57 }
  0x3d   : > { %4896 = vmatmul.mubr.f32.gmra.mrb[4].mxu0 %v6315_v5  ;;  %4915 = vmatprep.subr.mxu0 %v508_v58 }
  0x3e   : > { %4898 = vmatprep.mubr.f32.mxu0 %v6320_v7 }
  0x41   : > { %4899 = vmatmul.mubr.f32.gmra.mrb[6].mxu0 %v6323_v10 }
  0x42   : > { %4903 = vmatprep.mubr.f32.mxu0 %v6191_v8 }
  0x45   : > { %4904 = vmatmul.mubr.f32.vlgmr.msra.gmra.mrb[0].mxu0 %v6193_v9 }
  0x46   : > { %4906 = vmatprep.mubr.f32.mxu0 %v6198_v12  ;;  %4916 = vmatpush3.msra.mxu0 %v508_v58  ;;  %v318_v58 = vld [vmem:[%s7112_s4 + $0x40] sm:$0xff] }
  0x47   : > { %4929 = vmatprep.subr.mxu0 %v6278_v50 }
  0x49   : > { %4907 = vmatmul.mubr.f32.gmra.mrb[2].mxu0 %v6200_v13 }
  0x4a   : > { %4909 = vmatprep.mubr.f32.mxu0 %v6224_v23 }
  0x4d   : > { %4910 = vmatmul.mubr.f32.gmra.mrb[4].mxu0 %v6239_v27 }
  0x4e   : > { %4912 = vmatprep.mubr.f32.mxu0 %v6258_v38 }
  0x51   : > { %4913 = vmatmul.mubr.f32.gmra.mrb[6].mxu0 %v6285_v53 }
  0x52   : > { %4917 = vmatprep.mubr.f32.mxu0 %v6206_v15 }
  0x55   : > { %4918 = vmatmul.mubr.f32.vlgmr.msra.gmra.mrb[0].mxu0 %v6209_v16 }
  0x56   : > { %4920 = vmatprep.mubr.f32.mxu0 %v6219_v21  ;;  %4930 = vmatpush3.msra.mxu0 %v6278_v50 }
  0x57   : > { %4943 = vmatprep.subr.mxu0 %v509_v62 }
  0x59   : > { %4921 = vmatmul.mubr.f32.gmra.mrb[2].mxu0 %v6222_v22 }
  0x5a   : > { %4923 = vmatprep.mubr.f32.mxu0 %v6246_v32 }
  0x5d   : > { %4924 = vmatmul.mubr.f32.gmra.mrb[4].mxu0 %v6256_v37 }
  0x5e   : > { %4926 = vmatprep.mubr.f32.mxu0 %v6271_v45 }
  0x61   : > { %4927 = vmatmul.mubr.f32.gmra.mrb[6].mxu0 %v6297_v59 }
  0x62   : > { %4931 = vmatprep.mubr.f32.mxu0 %v6234_v25 }
  0x65   : > { %4932 = vmatmul.mubr.f32.vlgmr.msra.gmra.mrb[0].mxu0 %v6237_v26 }
  0x66   : > { %4934 = vmatprep.mubr.f32.mxu0 %v6243_v31  ;;  %4944 = vmatpush3.msra.mxu0 %v509_v62 }
  0x67   : > { %4957 = vmatprep.subr.mxu0 %v6278_v50 }
  0x69   : > { %4935 = vmatmul.mubr.f32.gmra.mrb[2].mxu0 %v6251_v35 }
  0x6a   : > { %4937 = vmatprep.mubr.f32.mxu0 %v6268_v44 }
  0x6d   : > { %4938 = vmatmul.mubr.f32.gmra.mrb[4].mxu0 %v6283_v52 }
  0x6e   : > { %4940 = vmatprep.mubr.f32.mxu0 %v6292_v56 }
  0x71   : > { %4941 = vmatmul.mubr.f32.gmra.mrb[6].mxu0 %v6307_v0 }
  0x72   : > { %4945 = vmatprep.mubr.f32.mxu0 %v6191_v8 }
  0x75   : > { %4946 = vmatmul.mubr.f32.vlgmr.msra.gmra.mrb[0].mxu0 %v6193_v9 }
  0x76   : > { %4948 = vmatprep.mubr.f32.mxu0 %v6198_v12  ;;  %4958 = vmatpush3.msra.mxu0 %v6278_v50 }
  0x77   : > { %5211 = vmatprep.subr.mxu0 %v6355_v11 }
  0x79   : > { %4949 = vmatmul.mubr.f32.gmra.mrb[2].mxu0 %v6200_v13 }
  0x7a   : > { %4951 = vmatprep.mubr.f32.mxu0 %v6224_v23 }
  0x7d   : > { %4952 = vmatmul.mubr.f32.gmra.mrb[4].mxu0 %v6239_v27 }
  0x7e   : > { %4954 = vmatprep.mubr.f32.mxu0 %v6258_v38 }
  0x81   : > { %4955 = vmatmul.mubr.f32.gmra.mrb[6].mxu0 %v6285_v53 }
  0x82   : > { %4959 = vmatprep.mubr.f32.mxu0 %v6191_v8 }
  0x85   : > { %4960 = vmatmul.mubr.f32.vlgmr.msra.gmra.mrb[0].mxu0 %v6193_v9 }
  0x86   : > { %4962 = vmatprep.mubr.f32.mxu0 %v6198_v12  ;;  %5212 = vmatpush3.msra.mxu0 %v6355_v11 }
  0x87   : > { %5225 = vmatprep.subr.mxu0 %v2536_v19 }
  0x89   : > { %4963 = vmatmul.mubr.f32.gmra.mrb[2].mxu0 %v6200_v13 }
  0x8a   : > { %4965 = vmatprep.mubr.f32.mxu0 %v6224_v23 }
  0x8d   : > { %4966 = vmatmul.mubr.f32.gmra.mrb[4].mxu0 %v6239_v27 }
  0x8e   : > { %4968 = vmatprep.mubr.f32.mxu0 %v6258_v38 }
  0x91   : > { %4969 = vmatmul.mubr.f32.gmra.mrb[6].mxu0 %v6285_v53 }
  0x92   : > { %5213 = vmatprep.mubr.f32.mxu0 %v6263_v42  ;;  %v1135_v42 = vsel %vm1115_vm2, %v316_v36, 0 }
  0x93   : > { %v6505_v48 = vand.u32 4294901760, %v1135_v42 }
  0x95   : > { %5214 = vmatmul.mubr.f32.vlgmr.msra.gmra.mrb[8].mxu0 %v6280_v51  ;;  %7174 = vst [vmem:[#allocation9_spill] sm:$0xff] %v6505_v48  ;;  %v6526_v63 = vsub.f32 %v1135_v42, %v6505_v48 }
  0x96   : > { %5216 = vmatprep.mubr.f32.mxu0 %v6287_v54  ;;  %5226 = vmatpush3.msra.mxu0 %v2536_v19 }
  0x97   : > { %5239 = vmatprep.subr.mxu0 %v2533_v14 }
  0x99   : > { %5217 = vmatmul.mubr.f32.gmra.mrb[10].mxu0 %v6302_v61 }
  0x9a   : > { %5219 = vmatprep.mubr.f32.mxu0 %v6310_v1 }
  0x9d   : > { %5220 = vmatmul.mubr.f32.gmra.mrb[12].mxu0 %v6315_v5 }
  0x9e   : > { %5222 = vmatprep.mubr.f32.mxu0 %v6320_v7 }
  0xa1   : > { %5223 = vmatmul.mubr.f32.gmra.mrb[14].mxu0 %v6323_v10  ;;  %v6536_v10 = vsel %vm1115_vm2, %v318_v58, 0 }
  0xa2   : > { %5227 = vmatprep.mubr.f32.mxu0 %v6191_v8 }
  0xa5   : > { %5228 = vmatmul.mubr.f32.vlgmr.msra.gmra.mrb[8].mxu0 %v6193_v9 }
  0xa6   : > { %5230 = vmatprep.mubr.f32.mxu0 %v6198_v12  ;;  %5240 = vmatpush3.msra.mxu0 %v2533_v14 }
  0xa7   : > { %5253 = vmatprep.subr.mxu0 %v6355_v11 }
  0xa9   : > { %5231 = vmatmul.mubr.f32.gmra.mrb[10].mxu0 %v6200_v13 }
  0xaa   : > { %5233 = vmatprep.mubr.f32.mxu0 %v6224_v23 }
  0xad   : > { %5234 = vmatmul.mubr.f32.gmra.mrb[12].mxu0 %v6239_v27 }
  0xae   : > { %5236 = vmatprep.mubr.f32.mxu0 %v6258_v38 }
  0xb1   : > { %5237 = vmatmul.mubr.f32.gmra.mrb[14].mxu0 %v6285_v53 }
  0xb2   : > { %5241 = vmatprep.mubr.f32.mxu0 %v6206_v15  ;;  %v310_v15 = vld [vmem:[%s7112_s4] sm:$0xff] }
  0xb5   : > { %5242 = vmatmul.mubr.f32.vlgmr.msra.gmra.mrb[8].mxu0 %v6209_v16  ;;  %v1117_v16 = vsel %vm1115_vm2, %v310_v15, 0 }
  0xb6   : > { %5244 = vmatprep.mubr.f32.mxu0 %v6219_v21  ;;  %5254 = vmatpush3.msra.mxu0 %v6355_v11  ;;  %v6426_v20 = vand.u32 4294901760, %v1117_v16 }
  0xb7   : > { %5267 = vmatprep.subr.mxu0 %v2534_v17 }
  0xb8   : > { %v6430_v21 = vsub.f32 %v1117_v16, %v6426_v20 }
  0xb9   : > { %5245 = vmatmul.mubr.f32.gmra.mrb[10].mxu0 %v6222_v22 }
  0xba   : > { %5247 = vmatprep.mubr.f32.mxu0 %v6246_v32 }
  0xbd   : > { %5248 = vmatmul.mubr.f32.gmra.mrb[12].mxu0 %v6256_v37 }
  0xbe   : > { %5250 = vmatprep.mubr.f32.mxu0 %v6271_v45 }
  0xc1   : > { %5251 = vmatmul.mubr.f32.gmra.mrb[14].mxu0 %v6297_v59 }
  0xc2   : > { %5255 = vmatprep.mubr.f32.mxu0 %v6234_v25 }
  0xc5   : > { %5256 = vmatmul.mubr.f32.vlgmr.msra.gmra.mrb[8].mxu0 %v6237_v26 }
  0xc6   : > { %5258 = vmatprep.mubr.f32.mxu0 %v6243_v31  ;;  %5268 = vmatpush3.msra.mxu0 %v2534_v17 }
  0xc7   : > { %5281 = vmatprep.subr.mxu0 %v6355_v11 }
  0xc9   : > { %5259 = vmatmul.mubr.f32.gmra.mrb[10].mxu0 %v6251_v35  ;;  %v1129_v35 = vsel %vm1115_vm2, %v314_v30, 0 }
  0xca   : > { %5261 = vmatprep.mubr.f32.mxu0 %v6268_v44  ;;  %v6493_v41 = vand.u32 4294901760, %v1129_v35  ;;  %v6499_v44 = vand.u32 4294901760, %v1132_v39 }
  0xcc   : > { %7172 = vst [vmem:[#allocation7_spill] sm:$0xff] %v6493_v41  ;;  %7173 = vst [vmem:[#allocation8_spill] sm:$0xff] %v6499_v44 }
  0xcd   : > { %5262 = vmatmul.mubr.f32.gmra.mrb[12].mxu0 %v6283_v52 }
  0xce   : > { %5264 = vmatprep.mubr.f32.mxu0 %v6292_v56  ;;  %v6514_v56 = vsub.f32 %v1132_v39, %v6499_v44  ;;  %v319_v39 = vld [vmem:[%s7112_s4 + $0x48] sm:$0xff] }
  0xd0   : > { %v6539_v17 = vand.u32 4294901760, %v6514_v56 }
  0xd1   : > { %5265 = vmatmul.mubr.f32.gmra.mrb[14].mxu0 %v6307_v0 }
  0xd2   : > { %5269 = vmatprep.mubr.f32.mxu0 %v6191_v8 }
  0xd5   : > { %5270 = vmatmul.mubr.f32.vlgmr.msra.gmra.mrb[8].mxu0 %v6193_v9 }
  0xd6   : > { %5272 = vmatprep.mubr.f32.mxu0 %v6198_v12  ;;  %5282 = vmatpush3.msra.mxu0 %v6355_v11 }
  0xd9   : > { %5273 = vmatmul.mubr.f32.gmra.mrb[10].mxu0 %v6200_v13 }
  0xda   : > { %5275 = vmatprep.mubr.f32.mxu0 %v6224_v23 }
  0xdd   : > { %5276 = vmatmul.mubr.f32.gmra.mrb[12].mxu0 %v6239_v27 }
  0xde   : > { %5278 = vmatprep.mubr.f32.mxu0 %v6258_v38 }
  0xe1   : > { %5279 = vmatmul.mubr.f32.gmra.mrb[14].mxu0 %v6285_v53 }
  0xe2   : > { %5283 = vmatprep.mubr.f32.mxu0 %v6191_v8  ;;  %v6434_v8 = vand.u32 4294901760, %v6430_v21 }
  0xe4   : > { %v1240_v22 = vsub.f32 %v6430_v21, %v6434_v8 }
  0xe5   : > { %5284 = vmatmul.mubr.f32.vlgmr.msra.gmra.mrb[8].mxu0 %v6193_v9 }
  0xe6   : > { %5286 = vmatprep.mubr.f32.mxu0 %v6198_v12  ;;  %v6440_v9 = vand.u32 4294901760, %v1240_v22  ;;  %v311_v12 = vld [vmem:[%s7112_s4 + $0x8] sm:$0xff]  ;;  %v6546_v22 = vand.u32 4294901760, %v6526_v63 }
  0xe7   : > { %v1120_v24 = vsel %vm1115_vm2, %v311_v12, 0 }
  0xe8   : > { %7171 = vst [vmem:[#allocation6_spill] sm:$0xff] %v6440_v9  ;;  %4987 = vmatprep.mubr.f32.mxu1 %v6440_v9 }
  0xe9   : > { %5287 = vmatmul.mubr.f32.gmra.mrb[10].mxu0 %v6200_v13  ;;  %v312_v13 = vld [vmem:[%s7112_s4 + $0x10] sm:$0xff] }
  0xea   : > { %5289 = vmatprep.mubr.f32.mxu0 %v6224_v23  ;;  %v313_v23 = vld [vmem:[%s7112_s4 + $0x18] sm:$0xff]  ;;  %v1123_v25 = vsel %vm1115_vm2, %v312_v13, 0 }
  0xeb   : > { %v1126_v26 = vsel %vm1115_vm2, %v313_v23, 0  ;;  %v6460_v28 = vand.u32 4294901760, %v1123_v25 }
  0xec   : > { %v6462_v29 = vand.u32 4294901760, %v1126_v26 }
  0xed   : > { %5290 = vmatmul.mubr.f32.gmra.mrb[12].mxu0 %v6239_v27  ;;  %v6458_v27 = vand.u32 4294901760, %v1120_v24  ;;  %v6471_v32 = vsub.f32 %v1123_v25, %v6460_v28 }
  0xee   : > { %5292 = vmatprep.mubr.f32.mxu0 %v6258_v38  ;;  %v6474_v33 = vsub.f32 %v1126_v26, %v6462_v29  ;;  %v6552_v26 = vand.u32 4294901760, %v6536_v10 }
  0xef   : > { %v6468_v31 = vsub.f32 %v1120_v24, %v6458_v27  ;;  %v6487_v38 = vand.u32 4294901760, %v6471_v32 }
  0xf0   : > { %v6491_v40 = vand.u32 4294901760, %v6474_v33  ;;  %7179 = vst [vmem:[#allocation14_spill] sm:$0xff] %v6552_v26 }
  0xf1   : > { %5293 = vmatmul.mubr.f32.gmra.mrb[14].mxu0 %v6285_v53  ;;  %v6484_v37 = vand.u32 4294901760, %v6468_v31  ;;  %v1260_v47 = vsub.f32 %v6471_v32, %v6487_v38  ;;  %v6511_v53 = vsub.f32 %v1129_v35, %v6493_v41 }
  0xf2   : > { %5391 = vmatprep.mubr.f32.mxu0 %v6430_v21  ;;  %v1270_v52 = vsub.f32 %v6474_v33, %v6491_v40 }
  0xf3   : > { %v1250_v46 = vsub.f32 %v6468_v31, %v6484_v37  ;;  %v6523_v62 = vand.u32 4294901760, %v1260_v47  ;;  %v6531_v4 = vand.u32 4294901760, %v6511_v53 }
  0xf4   : > { %v6528_v3 = vand.u32 4294901760, %v1270_v52 }
  0xf5   : > { %v6521_v61 = vand.u32 4294901760, %v1250_v46  ;;  %7177 = vst [vmem:[#allocation12_spill] sm:$0xff] %v6523_v62 }
  0xf6   : > { %7178 = vst [vmem:[#allocation13_spill] sm:$0xff] %v6528_v3 }
  0xf7   : > { %7176 = vst [vmem:[#allocation11_spill] sm:$0xff] %v6521_v61 }
 0x158   : > { %v4961_v45 = vpop.f32.mrb[0].mxu0 }
 0x159   : > { %v1108_v50 = vmax.f32 %v4961_v45, 0.0  ;;  %v1061_v51 = vpop.f32.mrb[1].mxu0 }
 0x15a   : > { %v1107_v54 = vmax.f32 %v1061_v51, 0.0 }
 0x15b   : > { %v1168_v55 = vand.u32 4294901760, %v1108_v50 }
 0x15c   : > { %v1165_v59 = vand.u32 4294901760, %v1107_v54  ;;  %v4964_v60 = vpop.f32.mrb[2].mxu0 }
 0x15d   : > { %v1406_v0 = vsub.f32 %v1108_v50, %v1168_v55  ;;  %v1110_v1 = vmax.f32 %v4964_v60, 0.0  ;;  %v1073_v2 = vpop.f32.mrb[3].mxu0  ;;  %v1144_v60 = vsel %vm1115_vm2, %v319_v39, 0 }
 0x15e   : > { %v6533_v5 = vpack.c.bf16 %v1168_v55, %v1165_v59  ;;  %v1399_v6 = vsub.f32 %v1107_v54, %v1165_v59  ;;  %v1109_v7 = vmax.f32 %v1073_v2, 0.0 }
 0x15f   : > { %v1407_v11 = vand.u32 4294901760, %v1406_v0  ;;  %v1174_v14 = vand.u32 4294901760, %v1110_v1 }
 0x160   : > { %v1400_v19 = vand.u32 4294901760, %v1399_v6  ;;  %v1171_v15 = vand.u32 4294901760, %v1109_v7  ;;  %v4967_v16 = vpop.f32.mrb[4].mxu0  ;;  %5536 = vmatprep.subr.bf16.mxu1 %v6533_v5  ;;  %v6548_v12 = vpack.c.bf16 %v1406_v0, %v1399_v6 }
 0x161   : > { %v1420_v13 = vsub.f32 %v1110_v1, %v1174_v14  ;;  %v1112_v23 = vmax.f32 %v4967_v16, 0.0  ;;  %v1085_v24 = vpop.f32.mrb[5].mxu0  ;;  %5538 = vmatpush3.bf16.msra.mxu1 %v6533_v5  ;;  %v1408_v25 = vsub.f32 %v1406_v0, %v1407_v11 }
 0x162   : > { %v6554_v30 = vpack.c.bf16 %v1174_v14, %v1171_v15  ;;  %v1413_v34 = vsub.f32 %v1109_v7, %v1171_v15  ;;  %v1111_v35 = vmax.f32 %v1085_v24, 0.0  ;;  %v1401_v36 = vsub.f32 %v1399_v6, %v1400_v19  ;;  %v320_v7 = vld [vmem:[%s7112_s4 + $0x50] sm:$0xff] }
 0x163   : > { %v1421_v42 = vand.u32 4294901760, %v1420_v13  ;;  %v1180_v43 = vand.u32 4294901760, %v1112_v23  ;;  %v1409_v45 = vand.u32 4294901760, %v1408_v25  ;;  %v6559_v46 = vpack.c.bf16 %v1407_v11, %v1400_v19 }
 0x164   : > { %v1414_v47 = vand.u32 4294901760, %v1413_v34  ;;  %v1177_v49 = vand.u32 4294901760, %v1111_v35  ;;  %v4970_v50 = vpop.f32.mrb[6].mxu0  ;;  %5540 = vmatprep.subr.bf16.mxu1 %v6554_v30  ;;  %v1402_v51 = vand.u32 4294901760, %v1401_v36  ;;  %v6562_v52 = vpack.c.bf16 %v1420_v13, %v1413_v34 }
 0x165   : > { %v1434_v54 = vsub.f32 %v1112_v23, %v1180_v43  ;;  %v1114_v55 = vmax.f32 %v4970_v50, 0.0  ;;  %v1097_v58 = vpop.f32.mrb[7].mxu0  ;;  %5542 = vmatpush3.bf16.msra.mxu1 %v6554_v30  ;;  %v1422_v59 = vsub.f32 %v1420_v13, %v1421_v42  ;;  %v1147_v39 = vsel %vm1115_vm2, %v320_v7, 0 }
 0x166   : > { %v6566_v0 = vpack.c.bf16 %v1180_v43, %v1177_v49  ;;  %v1427_v1 = vsub.f32 %v1111_v35, %v1177_v49  ;;  %v1113_v2 = vmax.f32 %v1097_v58, 0.0  ;;  %v5551_v6 = vpack.c.bf16 %v1409_v45, %v1402_v51  ;;  %v321_v49 = vld [vmem:[%s7112_s4 + $0x58] sm:$0xff] }
 0x167   : > { %v1435_v11 = vand.u32 4294901760, %v1434_v54  ;;  %v1186_v14 = vand.u32 4294901760, %v1114_v55  ;;  %v1415_v19 = vsub.f32 %v1413_v34, %v1414_v47  ;;  %v1423_v15 = vand.u32 4294901760, %v1422_v59 }
 0x168   : > { %7180 = vst [vmem:[#allocation15_spill] sm:$0xff] %v6566_v0  ;;  %v1428_v16 = vand.u32 4294901760, %v1427_v1  ;;  %v1183_v23 = vand.u32 4294901760, %v1113_v2  ;;  %5544 = vmatprep.subr.bf16.mxu1 %v6566_v0  ;;  %v6572_v13 = vpack.c.bf16 %v1434_v54, %v1427_v1  ;;  %v6574_v24 = vpack.c.bf16 %v1421_v42, %v1414_v47 }
 0x169   : > { %v1448_v25 = vsub.f32 %v1114_v55, %v1186_v14  ;;  %5546 = vmatpush3.bf16.msra.mxu1 %v6566_v0  ;;  %v1416_v35 = vand.u32 4294901760, %v1415_v19  ;;  %v1436_v36 = vsub.f32 %v1434_v54, %v1435_v11  ;;  %v6585_v55 = vand.u32 4294901760, %v1144_v60  ;;  %v322_v54 = vld [vmem:[%s7112_s4 + $0x60] sm:$0xff] }
 0x16a   : > { %v6578_v43 = vpack.c.bf16 %v1186_v14, %v1183_v23  ;;  %v1441_v45 = vsub.f32 %v1113_v2, %v1183_v23  ;;  %v1429_v34 = vsub.f32 %v1427_v1, %v1428_v16  ;;  %v6583_v50 = vpack.c.bf16 %v1435_v11, %v1428_v16 }
 0x16b   : > { %v1449_v51 = vand.u32 4294901760, %v1448_v25  ;;  %v5555_v42 = vpack.c.bf16 %v1423_v15, %v1416_v35  ;;  %v1437_v47 = vand.u32 4294901760, %v1436_v36  ;;  %7182 = vst [vmem:[#allocation17_spill] sm:$0xff] %v6585_v55  ;;  %v6593_v1 = vsub.f32 %v6536_v10, %v6552_v26  ;;  %v323_v10 = vld [vmem:[%s7112_s4 + $0x68] sm:$0xff] }
 0x16c   : > { %7181 = vst [vmem:[#allocation16_spill] sm:$0xff] %v6578_v43  ;;  %v1442_v58 = vand.u32 4294901760, %v1441_v45  ;;  %5548 = vmatprep.subr.bf16.mxu1 %v6578_v43  ;;  %v1430_v59 = vand.u32 4294901760, %v1429_v34  ;;  %v6595_v2 = vpack.c.bf16 %v1448_v25, %v1441_v45  ;;  %v1280_v7 = vsub.f32 %v6511_v53, %v6531_v4 }
 0x16d   : > { %5550 = vmatpush3.bf16.msra.mxu1 %v6578_v43  ;;  %v1450_v11 = vsub.f32 %v1448_v25, %v1449_v51  ;;  %v6600_v14 = vand.u32 4294901760, %v1147_v39  ;;  %v1150_v19 = vsel %vm1115_vm2, %v321_v49, 0  ;;  %v1153_v23 = vsel %vm1115_vm2, %v322_v54, 0 }
 0x16e   : > { %5552 = vmatprep.subr.bf16.mxu1 %v5551_v6  ;;  %v5559_v15 = vpack.c.bf16 %v1437_v47, %v1430_v59  ;;  %v1443_v16 = vsub.f32 %v1441_v45, %v1442_v58  ;;  %v6607_v35 = vpack.c.bf16 %v1449_v51, %v1442_v58  ;;  %v1290_v36 = vsub.f32 %v6514_v56, %v6539_v17  ;;  %v324_v45 = vld [vmem:[%s7112_s4 + $0x70] sm:$0xff] }
 0x16f   : > { %7183 = vst [vmem:[#allocation18_spill] sm:$0xff] %v6600_v14  ;;  %v1451_v34 = vand.u32 4294901760, %v1450_v11  ;;  %v1300_v25 = vsub.f32 %v6526_v63, %v6546_v22  ;;  %v6614_v49 = vand.u32 4294901760, %v6542_v18  ;;  %v6621_v51 = vand.u32 4294901760, %v6593_v1 }
 0x170   : > { %7184 = vst [vmem:[#allocation19_spill] sm:$0xff] %v6607_v35  ;;  %4988 = vmatmul.mubr.f32.vlgmr.msra.gmra.mrb[0].mxu1 %v6521_v61  ;;  %v1444_v47 = vand.u32 4294901760, %v1443_v16  ;;  %v6624_v54 = vsub.f32 %v1144_v60, %v6585_v55  ;;  %v6626_v58 = vand.u32 4294901760, %v1150_v19  ;;  %v6629_v59 = vand.u32 4294901760, %v1280_v7  ;;  %v325_v60 = vld [vmem:[%s7112_s4 + $0x78] sm:$0xff] }
 0x171   : > { %7185 = vst [vmem:[#allocation20_spill] sm:$0xff] %v6621_v51  ;;  %5554 = vmatpush3.bf16.msra.mxu1 %v5551_v6  ;;  %4990 = vmatprep.mubr.f32.mxu1 %v6523_v62  ;;  %v6632_v11 = vsub.f32 %v1147_v39, %v6600_v14  ;;  %v6634_v9 = vand.u32 4294901760, %v1153_v23  ;;  %v1156_v16 = vsel %vm1115_vm2, %v323_v10, 0  ;;  %v1159_v35 = vsel %vm1115_vm2, %v324_v45, 0 }
 0x172   : > { %7186 = vst [vmem:[#allocation21_spill] sm:$0xff] %v6626_v58  ;;  %7187 = vst [vmem:[#allocation22_spill] sm:$0xff] %v6629_v59  ;;  %5556 = vmatprep.subr.bf16.mxu1 %v5555_v42  ;;  %v5563_v61 = vpack.c.bf16 %v1451_v34, %v1444_v47  ;;  %v6641_v6 = vand.u32 4294901760, %v1290_v36  ;;  %v6643_v62 = vand.u32 4294901760, %v1300_v25  ;;  %v1310_v39 = vsub.f32 %v6542_v18, %v6614_v49 }
 0x173   : > { %7188 = vst [vmem:[#allocation23_spill] sm:$0xff] %v6634_v9  ;;  %v1320_v7 = vsub.f32 %v6593_v1, %v6621_v51  ;;  %v6651_v10 = vand.u32 4294901760, %v6624_v54  ;;  %v6654_v34 = vsub.f32 %v1150_v19, %v6626_v58  ;;  %v6656_v45 = vand.u32 4294901760, %v1156_v16 }
 0x174   : > { %7189 = vst [vmem:[#allocation24_spill] sm:$0xff] %v6641_v6  ;;  %7190 = vst [vmem:[#allocation25_spill] sm:$0xff] %v6643_v62  ;;  %4991 = vmatmul.mubr.f32.gmra.mrb[2].mxu1 %v6528_v3  ;;  %v6660_v36 = vand.u32 4294901760, %v6632_v11  ;;  %v6663_v25 = vsub.f32 %v1153_v23, %v6634_v9  ;;  %v6665_v47 = vand.u32 4294901760, %v1159_v35  ;;  %v1162_v3 = vsel %vm1115_vm2, %v325_v60, 0 }
 0x175   : > { %7191 = vst [vmem:[#allocation26_spill] sm:$0xff] %v6651_v10  ;;  %7192 = vst [vmem:[#allocation27_spill] sm:$0xff] %v6656_v45  ;;  %5558 = vmatpush3.bf16.msra.mxu1 %v5555_v42  ;;  %4993 = vmatprep.mubr.f32.mxu1 %v6629_v59  ;;  %v6668_v51 = vand.u32 4294901760, %v1310_v39  ;;  %v1330_v42 = vsub.f32 %v6624_v54, %v6651_v10  ;;  %v6674_v19 = vand.u32 4294901760, %v6654_v34  ;;  %v6679_v23 = vand.u32 4294901760, %v1162_v3 }
 0x176   : > { %7193 = vst [vmem:[#allocation28_spill] sm:$0xff] %v6660_v36  ;;  %7194 = vst [vmem:[#allocation29_spill] sm:$0xff] %v6665_v47  ;;  %5560 = vmatprep.subr.bf16.mxu1 %v5559_v15  ;;  %v6677_v59 = vsub.f32 %v1156_v16, %v6656_v45  ;;  %v6682_v60 = vand.u32 4294901760, %v1320_v7  ;;  %v1340_v39 = vsub.f32 %v6632_v11, %v6660_v36 }
 0x177   : > { %7195 = vst [vmem:[#allocation30_spill] sm:$0xff] %v6668_v51  ;;  %7196 = vst [vmem:[#allocation31_spill] sm:$0xff] %v6679_v23  ;;  %v6690_v10 = vsub.f32 %v1159_v35, %v6665_v47  ;;  %v6693_v16 = vand.u32 4294901760, %v1330_v42 }
 0x178   : > { %4994 = vmatmul.mubr.f32.gmra.mrb[4].mxu1 %v6641_v6  ;;  %7197 = vst [vmem:[#allocation32_spill] sm:$0xff] %v6682_v60  ;;  %v6687_v6 = vand.u32 4294901760, %v6663_v25  ;;  %v6698_v7 = vand.u32 4294901760, %v6677_v59  ;;  %v6704_v36 = vand.u32 4294901760, %v1340_v39 }
 0x179   : > { %5562 = vmatpush3.bf16.msra.mxu1 %v5559_v15  ;;  %4996 = vmatprep.mubr.f32.mxu1 %v6643_v62  ;;  %7199 = vst [vmem:[#allocation34_spill] sm:$0xff] %v6693_v16  ;;  %v1350_v15 = vsub.f32 %v6654_v34, %v6674_v19  ;;  %v6701_v62 = vsub.f32 %v1162_v3, %v6679_v23  ;;  %v6709_v42 = vand.u32 4294901760, %v6690_v10 }
 0x17a   : > { %7198 = vst [vmem:[#allocation33_spill] sm:$0xff] %v6687_v6  ;;  %5564 = vmatprep.subr.bf16.mxu1 %v5563_v61  ;;  %7200 = vst [vmem:[#allocation35_spill] sm:$0xff] %v6698_v7  ;;  %v1360_v35 = vsub.f32 %v6663_v25, %v6687_v6  ;;  %v1370_v3 = vsub.f32 %v6677_v59, %v6698_v7 }
 0x17b   : > { %7201 = vst [vmem:[#allocation36_spill] sm:$0xff] %v6704_v36 }
 0x17c   : > { %4997 = vmatmul.mubr.f32.gmra.mrb[6].mxu1 %v6668_v51  ;;  %v6713_v51 = vand.u32 4294901760, %v1350_v15  ;;  %v6721_v39 = vand.u32 4294901760, %v1360_v35  ;;  %v6726_v6 = vand.u32 4294901760, %v1370_v3 }
 0x17d   : > { %5566 = vmatpush3.bf16.msra.mxu1 %v5563_v61  ;;  %4999 = vmatprep.mubr.f32.mxu1 %v6682_v60  ;;  %v6718_v61 = vand.u32 4294901760, %v6701_v62  ;;  %v1380_v60 = vsub.f32 %v6690_v10, %v6709_v42 }
 0x17e   : > { %5568 = vmatprep.subr.bf16.mxu1 %v6548_v12  ;;  %7202 = vst [vmem:[#allocation37_spill] sm:$0xff] %v6713_v51  ;;  %7203 = vst [vmem:[#allocation38_spill] sm:$0xff] %v6721_v39 }
 0x17f   : > { %7204 = vst [vmem:[#allocation39_spill] sm:$0xff] %v6726_v6  ;;  %v1390_v15 = vsub.f32 %v6701_v62, %v6718_v61 }
 0x180   : > { %5000 = vmatmul.mubr.f32.gmra.mrb[8].mxu1 %v6693_v16  ;;  %v6731_v16 = vand.u32 4294901760, %v1380_v60 }
 0x181   : > { %5002 = vmatprep.mubr.f32.mxu1 %v6704_v36  ;;  %v6734_v7 = vand.u32 4294901760, %v1390_v15 }
 0x182   : > { %7205 = vst [vmem:[#allocation40_spill] sm:$0xff] %v6731_v16 }
 0x183   : > { %7206 = vst [vmem:[#allocation41_spill] sm:$0xff] %v6734_v7 }
 0x184   : > { %5003 = vmatmul.mubr.f32.gmra.mrb[10].mxu1 %v6713_v51 }
 0x185   : > { %5005 = vmatprep.mubr.f32.mxu1 %v6721_v39 }
 0x188   : > { %5006 = vmatmul.mubr.f32.gmra.mrb[12].mxu1 %v6726_v6 }
 0x189   : > { %5008 = vmatprep.mubr.f32.mxu1 %v6731_v16 }
 0x18c   : > { %5009 = vmatmul.mubr.f32.gmra.mrb[14].mxu1 %v6734_v7 }
 0x18d   : > { %5027 = vmatprep.mubr.f32.mxu1 %v6426_v20 }
 0x190   : > { %5028 = vmatmul.mubr.f32.vlgmr.msra.gmra.mrb[0].mxu1 %v6458_v27 }
 0x191   : > { %5570 = vmatpush3.bf16.msra.mxu1 %v6548_v12  ;;  %5030 = vmatprep.mubr.f32.mxu1 %v6460_v28 }
 0x192   : > { %5572 = vmatprep.subr.bf16.mxu1 %v6562_v52 }
 0x194   : > { %5031 = vmatmul.mubr.f32.gmra.mrb[2].mxu1 %v6462_v29 }
 0x195   : > { %5574 = vmatpush3.bf16.msra.mxu1 %v6562_v52  ;;  %5033 = vmatprep.mubr.f32.mxu1 %v6493_v41 }
 0x196   : > { %5576 = vmatprep.subr.bf16.mxu1 %v6572_v13 }
 0x198   : > { %5034 = vmatmul.mubr.f32.gmra.mrb[4].mxu1 %v6499_v44 }
 0x199   : > { %5578 = vmatpush3.bf16.msra.mxu1 %v6572_v13  ;;  %5036 = vmatprep.mubr.f32.mxu1 %v6505_v48 }
 0x19a   : > { %5580 = vmatprep.subr.bf16.mxu1 %v6595_v2 }
 0x19c   : > { %5037 = vmatmul.mubr.f32.gmra.mrb[6].mxu1 %v6516_v57 }
 0x19d   : > { %5582 = vmatpush3.bf16.msra.mxu1 %v6595_v2  ;;  %5039 = vmatprep.mubr.f32.mxu1 %v6552_v26 }
 0x19e   : > { %5584 = vmatprep.subr.bf16.mxu1 %v6533_v5 }
 0x1a0   : > { %5040 = vmatmul.mubr.f32.gmra.mrb[8].mxu1 %v6585_v55 }
 0x1a1   : > { %5042 = vmatprep.mubr.f32.mxu1 %v6600_v14 }
 0x1a4   : > { %5043 = vmatmul.mubr.f32.gmra.mrb[10].mxu1 %v6626_v58 }
 0x1a5   : > { %5045 = vmatprep.mubr.f32.mxu1 %v6634_v9 }
 0x1a8   : > { %5046 = vmatmul.mubr.f32.gmra.mrb[12].mxu1 %v6656_v45 }
 0x1a9   : > { %5048 = vmatprep.mubr.f32.mxu1 %v6665_v47 }
 0x1ac   : > { %5049 = vmatmul.mubr.f32.gmra.mrb[14].mxu1 %v6679_v23 }
 0x1ad   : > { %5067 = vmatprep.mubr.f32.mxu1 %v6430_v21 }
 0x1b0   : > { %5068 = vmatmul.mubr.f32.vlgmr.msra.gmra.mrb[0].mxu1 %v6468_v31 }
 0x1b1   : > { %5586 = vmatpush3.bf16.msra.mxu1 %v6533_v5  ;;  %5070 = vmatprep.mubr.f32.mxu1 %v6471_v32 }
 0x1b2   : > { %5588 = vmatprep.subr.bf16.mxu1 %v6554_v30 }
 0x1b4   : > { %5071 = vmatmul.mubr.f32.gmra.mrb[2].mxu1 %v6474_v33 }
 0x1b5   : > { %5590 = vmatpush3.bf16.msra.mxu1 %v6554_v30  ;;  %5073 = vmatprep.mubr.f32.mxu1 %v6511_v53 }
 0x1b6   : > { %5592 = vmatprep.subr.bf16.mxu1 %v6566_v0 }
 0x1b8   : > { %5074 = vmatmul.mubr.f32.gmra.mrb[4].mxu1 %v6514_v56  ;;  %v5285_v12 = vpop.f32.mrb[8].mxu0 }
 0x1b9   : > { %5594 = vmatpush3.bf16.msra.mxu1 %v6566_v0  ;;  %v3133_v21 = vmax.f32 %v5285_v12, 0.0  ;;  %v3086_v52 = vpop.f32.mrb[9].mxu0  ;;  %5076 = vmatprep.mubr.f32.mxu1 %v6526_v63 }
 0x1ba   : > { %5596 = vmatprep.subr.bf16.mxu1 %v6578_v43  ;;  %v3132_v13 = vmax.f32 %v3086_v52, 0.0 }
 0x1bb   : > { %v3144_v2 = vand.u32 4294901760, %v3133_v21 }
 0x1bc   : > { %v3141_v60 = vand.u32 4294901760, %v3132_v13  ;;  %5077 = vmatmul.mubr.f32.gmra.mrb[6].mxu1 %v6542_v18  ;;  %v5288_v35 = vpop.f32.mrb[10].mxu0 }
 0x1bd   : > { %v3382_v3 = vsub.f32 %v3133_v21, %v3144_v2  ;;  %5598 = vmatpush3.bf16.msra.mxu1 %v6578_v43  ;;  %v3135_v15 = vmax.f32 %v5288_v35, 0.0  ;;  %v3098_v7 = vpop.f32.mrb[11].mxu0  ;;  %5079 = vmatprep.mubr.f32.mxu1 %v6593_v1 }
 0x1be   : > { %v6778_v16 = vpack.c.bf16 %v3144_v2, %v3141_v60  ;;  %v3375_v12 = vsub.f32 %v3132_v13, %v3141_v60  ;;  %5600 = vmatprep.subr.bf16.mxu1 %v6559_v46  ;;  %v3134_v6 = vmax.f32 %v3098_v7, 0.0 }
 0x1bf   : > { %v3150_v39 = vand.u32 4294901760, %v3135_v15  ;;  %v3383_v52 = vand.u32 4294901760, %v3382_v3 }
 0x1c0   : > { %v3147_v51 = vand.u32 4294901760, %v3134_v6  ;;  %5080 = vmatmul.mubr.f32.gmra.mrb[8].mxu1 %v6624_v54  ;;  %v5291_v36 = vpop.f32.mrb[12].mxu0  ;;  %v5663_v23 = vpack.c.bf16 %v3382_v3, %v3375_v12  ;;  %v3376_v21 = vand.u32 4294901760, %v3375_v12 }
 0x1c1   : > { %v3396_v47 = vsub.f32 %v3135_v15, %v3150_v39  ;;  %v3137_v45 = vmax.f32 %v5291_v36, 0.0  ;;  %v3110_v35 = vpop.f32.mrb[13].mxu0  ;;  %5082 = vmatprep.mubr.f32.mxu1 %v6632_v11  ;;  %v3384_v9 = vsub.f32 %v3382_v3, %v3383_v52 }
 0x1c2   : > { %v6783_v2 = vpack.c.bf16 %v3150_v39, %v3147_v51  ;;  %v3389_v13 = vsub.f32 %v3134_v6, %v3147_v51  ;;  %v3136_v60 = vmax.f32 %v3110_v35, 0.0  ;;  %5664 = vmatprep.subr.bf16.mxu0 %v5663_v23  ;;  %v6785_v7 = vpack.c.bf16 %v3383_v52, %v3376_v21 }
 0x1c3   : > { %v3156_v58 = vand.u32 4294901760, %v3137_v45  ;;  %5666 = vmatpush3.bf16.msra.mxu0 %v5663_v23  ;;  %v3397_v14 = vand.u32 4294901760, %v3396_v47  ;;  %v3377_v55 = vsub.f32 %v3375_v12, %v3376_v21  ;;  %v3385_v26 = vand.u32 4294901760, %v3384_v9 }
 0x1c4   : > { %v3153_v57 = vand.u32 4294901760, %v3136_v60  ;;  %5083 = vmatmul.mubr.f32.gmra.mrb[10].mxu1 %v6654_v34  ;;  %v5294_v36 = vpop.f32.mrb[14].mxu0  ;;  %v5667_v15 = vpack.c.bf16 %v3396_v47, %v3389_v13  ;;  %v3390_v43 = vand.u32 4294901760, %v3389_v13 }
 0x1c5   : > { %v3410_v48 = vsub.f32 %v3137_v45, %v3156_v58  ;;  %v3139_v3 = vmax.f32 %v5294_v36, 0.0  ;;  %v3122_v39 = vpop.f32.mrb[15].mxu0  ;;  %5085 = vmatprep.mubr.f32.mxu1 %v6663_v25  ;;  %v3378_v51 = vand.u32 4294901760, %v3377_v55  ;;  %v3398_v6 = vsub.f32 %v3396_v47, %v3397_v14 }
 0x1c6   : > { %v6789_v52 = vpack.c.bf16 %v3156_v58, %v3153_v57  ;;  %v3403_v35 = vsub.f32 %v3136_v60, %v3153_v57  ;;  %v3138_v23 = vmax.f32 %v3122_v39, 0.0  ;;  %5668 = vmatprep.subr.bf16.mxu0 %v5667_v15  ;;  %v6791_v12 = vpack.c.bf16 %v3397_v14, %v3390_v43 }
 0x1c7   : > { %v3162_v9 = vand.u32 4294901760, %v3139_v3  ;;  %5670 = vmatpush3.bf16.msra.mxu0 %v5667_v15  ;;  %v3411_v21 = vand.u32 4294901760, %v3410_v48  ;;  %v6793_v44 = vpack.c.bf16 %v3385_v26, %v3378_v51  ;;  %v3391_v0 = vsub.f32 %v3389_v13, %v3390_v43 }
 0x1c8   : > { %v3159_v45 = vand.u32 4294901760, %v3138_v23  ;;  %5086 = vmatmul.mubr.f32.gmra.mrb[12].mxu1 %v6677_v59  ;;  %v5671_v36 = vpack.c.bf16 %v3410_v48, %v3403_v35  ;;  %v3404_v41 = vand.u32 4294901760, %v3403_v35  ;;  %v3399_v55 = vand.u32 4294901760, %v3398_v6 }
 0x1c9   : > { %v3424_v47 = vsub.f32 %v3139_v3, %v3162_v9  ;;  %5088 = vmatprep.mubr.f32.mxu1 %v6690_v10  ;;  %v3392_v57 = vand.u32 4294901760, %v3391_v0  ;;  %v3412_v58 = vsub.f32 %v3410_v48, %v3411_v21 }
 0x1ca   : > { %v6797_v60 = vpack.c.bf16 %v3162_v9, %v3159_v45  ;;  %v3417_v14 = vsub.f32 %v3138_v23, %v3159_v45  ;;  %5672 = vmatprep.subr.bf16.mxu0 %v5671_v36  ;;  %v6799_v15 = vpack.c.bf16 %v3411_v21, %v3404_v41  ;;  %v3405_v26 = vsub.f32 %v3403_v35, %v3404_v41  ;;  %v7241_v45 = vld [vmem:[#allocation40_spill] sm:$0xff] }
 0x1cb   : > { %5674 = vmatpush3.bf16.msra.mxu0 %v5671_v36  ;;  %v3425_v43 = vand.u32 4294901760, %v3424_v47  ;;  %v6801_v13 = vpack.c.bf16 %v3399_v55, %v3392_v57  ;;  %v3413_v39 = vand.u32 4294901760, %v3412_v58  ;;  %v7242_v36 = vld [vmem:[#allocation41_spill] sm:$0xff] }
 0x1cc   : > { %5089 = vmatmul.mubr.f32.gmra.mrb[14].mxu1 %v6701_v62  ;;  %v5675_v51 = vpack.c.bf16 %v3424_v47, %v3417_v14  ;;  %v3418_v3 = vand.u32 4294901760, %v3417_v14  ;;  %v3406_v6 = vand.u32 4294901760, %v3405_v26 }
 0x1cd   : > { %5107 = vmatprep.mubr.f32.mxu1 %v6434_v8  ;;  %v3426_v48 = vsub.f32 %v3424_v47, %v3425_v43 }
 0x1ce   : > { %5676 = vmatprep.subr.bf16.mxu0 %v5675_v51  ;;  %v6805_v0 = vpack.c.bf16 %v3425_v43, %v3418_v3  ;;  %v6807_v23 = vpack.c.bf16 %v3413_v39, %v3406_v6  ;;  %v3419_v9 = vsub.f32 %v3417_v14, %v3418_v3 }
 0x1cf   : > { %5678 = vmatpush3.bf16.msra.mxu0 %v5675_v51  ;;  %v3427_v41 = vand.u32 4294901760, %v3426_v48 }
 0x1d0   : > { %5108 = vmatmul.mubr.f32.vlgmr.msra.gmra.mrb[0].mxu1 %v6484_v37  ;;  %5680 = vmatprep.subr.bf16.mxu0 %v6778_v16  ;;  %v3420_v35 = vand.u32 4294901760, %v3419_v9 }
 0x1d1   : > { %5602 = vmatpush3.bf16.msra.mxu1 %v6559_v46  ;;  %5110 = vmatprep.mubr.f32.mxu1 %v6487_v38  ;;  %v7224_v46 = vld [vmem:[#allocation27_spill] sm:$0xff] }
 0x1d2   : > { %5604 = vmatprep.subr.bf16.mxu1 %v6574_v24  ;;  %5392 = vmatmul.mubr.f32.vlgmr.msra.gmra.mrb[16].mxu0 %v6468_v31  ;;  %v6815_v21 = vpack.c.bf16 %v3427_v41, %v3420_v35  ;;  %v7207_v31 = vld [vmem:[#allocation19_spill] sm:$0xff] }
 0x1d3   : > { %5682 = vmatpush3.bf16.msra.mxu0 %v6778_v16  ;;  %5394 = vmatprep.mubr.f32.mxu0 %v6471_v32  ;;  %v7208_v32 = vld [vmem:[#allocation20_spill] sm:$0xff] }
 0x1d4   : > { %5111 = vmatmul.mubr.f32.gmra.mrb[2].mxu1 %v6491_v40  ;;  %5684 = vmatprep.subr.bf16.mxu0 %v6783_v2 }
 0x1d5   : > { %5606 = vmatpush3.bf16.msra.mxu1 %v6574_v24  ;;  %5113 = vmatprep.mubr.f32.mxu1 %v6531_v4  ;;  %v7225_v24 = vld [vmem:[#allocation29_spill] sm:$0xff] }
 0x1d6   : > { %5608 = vmatprep.subr.bf16.mxu1 %v6583_v50  ;;  %5395 = vmatmul.mubr.f32.gmra.mrb[18].mxu0 %v6474_v33  ;;  %v7209_v33 = vld [vmem:[#allocation26_spill] sm:$0xff] }
 0x1d7   : > { %5686 = vmatpush3.bf16.msra.mxu0 %v6783_v2  ;;  %5397 = vmatprep.mubr.f32.mxu0 %v6511_v53  ;;  %v7210_v53 = vld [vmem:[#allocation28_spill] sm:$0xff] }
 0x1d8   : > { %5114 = vmatmul.mubr.f32.gmra.mrb[4].mxu1 %v6539_v17  ;;  %5688 = vmatprep.subr.bf16.mxu0 %v6789_v52 }
 0x1d9   : > { %5610 = vmatpush3.bf16.msra.mxu1 %v6583_v50  ;;  %5116 = vmatprep.mubr.f32.mxu1 %v6546_v22  ;;  %v7226_v50 = vld [vmem:[#allocation31_spill] sm:$0xff] }
 0x1da   : > { %5612 = vmatprep.subr.bf16.mxu1 %v7207_v31  ;;  %5398 = vmatmul.mubr.f32.gmra.mrb[20].mxu0 %v6514_v56  ;;  %v7211_v56 = vld [vmem:[#allocation33_spill] sm:$0xff] }
 0x1db   : > { %5690 = vmatpush3.bf16.msra.mxu0 %v6789_v52  ;;  %5400 = vmatprep.mubr.f32.mxu0 %v6526_v63  ;;  %v7212_v63 = vld [vmem:[#allocation35_spill] sm:$0xff] }
 0x1dc   : > { %5117 = vmatmul.mubr.f32.gmra.mrb[6].mxu1 %v6614_v49  ;;  %5692 = vmatprep.subr.bf16.mxu0 %v6797_v60 }
 0x1dd   : > { %5614 = vmatpush3.bf16.msra.mxu1 %v7207_v31  ;;  %5119 = vmatprep.mubr.f32.mxu1 %v7208_v32 }
 0x1de   : > { %5616 = vmatprep.subr.bf16.mxu1 %v6533_v5  ;;  %5401 = vmatmul.mubr.f32.gmra.mrb[22].mxu0 %v6542_v18  ;;  %v7221_v18 = vld [vmem:[#allocation18_spill] sm:$0xff] }
 0x1df   : > { %5694 = vmatpush3.bf16.msra.mxu0 %v6797_v60  ;;  %5403 = vmatprep.mubr.f32.mxu0 %v6593_v1  ;;  %v7227_v1 = vld [vmem:[#allocation6_spill] sm:$0xff] }
 0x1e0   : > { %5120 = vmatmul.mubr.f32.gmra.mrb[8].mxu1 %v7209_v33  ;;  %5696 = vmatprep.subr.bf16.mxu0 %v6785_v7 }
 0x1e1   : > { %5122 = vmatprep.mubr.f32.mxu1 %v7210_v53 }
 0x1e2   : > { %5404 = vmatmul.mubr.f32.gmra.mrb[24].mxu0 %v6624_v54  ;;  %v7229_v54 = vld [vmem:[#allocation12_spill] sm:$0xff] }
 0x1e3   : > { %5406 = vmatprep.mubr.f32.mxu0 %v6632_v11  ;;  %v7231_v11 = vld [vmem:[#allocation22_spill] sm:$0xff] }
 0x1e4   : > { %5123 = vmatmul.mubr.f32.gmra.mrb[10].mxu1 %v6674_v19 }
 0x1e5   : > { %5125 = vmatprep.mubr.f32.mxu1 %v7211_v56 }
 0x1e6   : > { %5407 = vmatmul.mubr.f32.gmra.mrb[26].mxu0 %v6654_v34  ;;  %v7234_v34 = vld [vmem:[#allocation30_spill] sm:$0xff] }
 0x1e7   : > { %5409 = vmatprep.mubr.f32.mxu0 %v6663_v25  ;;  %v7235_v25 = vld [vmem:[#allocation32_spill] sm:$0xff] }
 0x1e8   : > { %5126 = vmatmul.mubr.f32.gmra.mrb[12].mxu1 %v7212_v63 }
 0x1e9   : > { %5128 = vmatprep.mubr.f32.mxu1 %v6709_v42 }
 0x1ea   : > { %5410 = vmatmul.mubr.f32.gmra.mrb[28].mxu0 %v6677_v59  ;;  %v7230_v59 = vld [vmem:[#allocation13_spill] sm:$0xff] }
 0x1eb   : > { %5412 = vmatprep.mubr.f32.mxu0 %v6690_v10  ;;  %v7232_v10 = vld [vmem:[#allocation24_spill] sm:$0xff] }
 0x1ec   : > { %5129 = vmatmul.mubr.f32.gmra.mrb[14].mxu1 %v6718_v61 }
 0x1ed   : > { %5147 = vmatprep.mubr.f32.mxu1 %v6426_v20 }
 0x1ee   : > { %5413 = vmatmul.mubr.f32.gmra.mrb[30].mxu0 %v6701_v62  ;;  %v7214_v62 = vld [vmem:[#allocation15_spill] sm:$0xff] }
 0x1ef   : > { %5431 = vmatprep.mubr.f32.mxu0 %v6434_v8  ;;  %v7213_v8 = vld [vmem:[#allocation7_spill] sm:$0xff] }
 0x1f0   : > { %5148 = vmatmul.mubr.f32.vlgmr.msra.gmra.mrb[0].mxu1 %v6458_v27 }
 0x1f1   : > { %5618 = vmatpush3.bf16.msra.mxu1 %v6533_v5  ;;  %5150 = vmatprep.mubr.f32.mxu1 %v6460_v28  ;;  %v7217_v5 = vld [vmem:[#allocation16_spill] sm:$0xff] }
 0x1f2   : > { %5620 = vmatprep.subr.bf16.mxu1 %v6554_v30  ;;  %5432 = vmatmul.mubr.f32.vlgmr.msra.gmra.mrb[16].mxu0 %v6484_v37  ;;  %v7215_v37 = vld [vmem:[#allocation8_spill] sm:$0xff] }
 0x1f3   : > { %5698 = vmatpush3.bf16.msra.mxu0 %v6785_v7  ;;  %5434 = vmatprep.mubr.f32.mxu0 %v6487_v38  ;;  %v7216_v38 = vld [vmem:[#allocation9_spill] sm:$0xff]  ;;  %v7239_v7 = vld [vmem:[#allocation38_spill] sm:$0xff] }
 0x1f4   : > { %5700 = vmatprep.subr.bf16.mxu0 %v6791_v12  ;;  %5151 = vmatmul.mubr.f32.gmra.mrb[2].mxu1 %v6462_v29 }
 0x1f5   : > { %5622 = vmatpush3.bf16.msra.mxu1 %v6554_v30  ;;  %5153 = vmatprep.mubr.f32.mxu1 %v7213_v8  ;;  %v7223_v30 = vld [vmem:[#allocation23_spill] sm:$0xff] }
 0x1f6   : > { %5624 = vmatprep.subr.bf16.mxu1 %v7214_v62  ;;  %5435 = vmatmul.mubr.f32.gmra.mrb[18].mxu0 %v6491_v40  ;;  %v7218_v40 = vld [vmem:[#allocation10_spill] sm:$0xff] }
 0x1f7   : > { %5702 = vmatpush3.bf16.msra.mxu0 %v6791_v12  ;;  %5437 = vmatprep.mubr.f32.mxu0 %v6531_v4  ;;  %v7219_v4 = vld [vmem:[#allocation14_spill] sm:$0xff]  ;;  %v7240_v12 = vld [vmem:[#allocation39_spill] sm:$0xff] }
 0x1f8   : > { %5704 = vmatprep.subr.bf16.mxu0 %v6799_v15  ;;  %5154 = vmatmul.mubr.f32.gmra.mrb[4].mxu1 %v7215_v37 }
 0x1f9   : > { %5626 = vmatpush3.bf16.msra.mxu1 %v7214_v62  ;;  %5156 = vmatprep.mubr.f32.mxu1 %v7216_v38 }
 0x1fa   : > { %5628 = vmatprep.subr.bf16.mxu1 %v7217_v5  ;;  %5438 = vmatmul.mubr.f32.gmra.mrb[20].mxu0 %v6539_v17  ;;  %v7220_v17 = vld [vmem:[#allocation17_spill] sm:$0xff] }
 0x1fb   : > { %5706 = vmatpush3.bf16.msra.mxu0 %v6799_v15  ;;  %5440 = vmatprep.mubr.f32.mxu0 %v6546_v22  ;;  %v7222_v22 = vld [vmem:[#allocation21_spill] sm:$0xff] }
 0x1fc   : > { %5708 = vmatprep.subr.bf16.mxu0 %v6805_v0  ;;  %5157 = vmatmul.mubr.f32.gmra.mrb[6].mxu1 %v7218_v40 }
 0x1fd   : > { %5630 = vmatpush3.bf16.msra.mxu1 %v7217_v5  ;;  %5159 = vmatprep.mubr.f32.mxu1 %v7219_v4 }
 0x1fe   : > { %5632 = vmatprep.subr.bf16.mxu1 %v6778_v16  ;;  %5441 = vmatmul.mubr.f32.gmra.mrb[22].mxu0 %v6614_v49  ;;  %v7228_v49 = vld [vmem:[#allocation11_spill] sm:$0xff] }
 0x1ff   : > { %5710 = vmatpush3.bf16.msra.mxu0 %v6805_v0  ;;  %5443 = vmatprep.mubr.f32.mxu0 %v7208_v32 }
 0x200   : > { %5712 = vmatprep.subr.bf16.mxu0 %v6778_v16  ;;  %5160 = vmatmul.mubr.f32.gmra.mrb[8].mxu1 %v7220_v17 }
 0x201   : > { %5162 = vmatprep.mubr.f32.mxu1 %v7221_v18 }
 0x202   : > { %5444 = vmatmul.mubr.f32.gmra.mrb[24].mxu0 %v7209_v33 }
 0x203   : > { %5446 = vmatprep.mubr.f32.mxu0 %v7210_v53 }
 0x204   : > { %5163 = vmatmul.mubr.f32.gmra.mrb[10].mxu1 %v7222_v22 }
 0x205   : > { %5165 = vmatprep.mubr.f32.mxu1 %v7223_v30 }
 0x206   : > { %5447 = vmatmul.mubr.f32.gmra.mrb[26].mxu0 %v6674_v19  ;;  %v7236_v19 = vld [vmem:[#allocation34_spill] sm:$0xff] }
 0x207   : > { %5449 = vmatprep.mubr.f32.mxu0 %v7211_v56 }
 0x208   : > { %5166 = vmatmul.mubr.f32.gmra.mrb[12].mxu1 %v7224_v46 }
 0x209   : > { %5168 = vmatprep.mubr.f32.mxu1 %v7225_v24 }
 0x20a   : > { %5450 = vmatmul.mubr.f32.gmra.mrb[28].mxu0 %v7212_v63 }
 0x20b   : > { %5452 = vmatprep.mubr.f32.mxu0 %v6709_v42  ;;  %v7237_v42 = vld [vmem:[#allocation36_spill] sm:$0xff] }
 0x20c   : > { %5169 = vmatmul.mubr.f32.gmra.mrb[14].mxu1 %v7226_v50 }
 0x20d   : > { %5187 = vmatprep.mubr.f32.mxu1 %v6426_v20 }
 0x20e   : > { %5453 = vmatmul.mubr.f32.gmra.mrb[30].mxu0 %v6718_v61  ;;  %v7238_v61 = vld [vmem:[#allocation37_spill] sm:$0xff] }
 0x20f   : > { %5471 = vmatprep.mubr.f32.mxu0 %v6426_v20 }
 0x210   : > { %5188 = vmatmul.mubr.f32.vlgmr.msra.gmra.mrb[0].mxu1 %v6458_v27 }
 0x211   : > { %5634 = vmatpush3.bf16.msra.mxu1 %v6778_v16  ;;  %5190 = vmatprep.mubr.f32.mxu1 %v6460_v28 }
 0x212   : > { %5636 = vmatprep.subr.bf16.mxu1 %v6783_v2  ;;  %5472 = vmatmul.mubr.f32.vlgmr.msra.gmra.mrb[16].mxu0 %v6458_v27 }
 0x213   : > { %5714 = vmatpush3.bf16.msra.mxu0 %v6778_v16  ;;  %5474 = vmatprep.mubr.f32.mxu0 %v6460_v28 }
 0x214   : > { %5716 = vmatprep.subr.bf16.mxu0 %v6783_v2  ;;  %5191 = vmatmul.mubr.f32.gmra.mrb[2].mxu1 %v6462_v29 }
 0x215   : > { %5638 = vmatpush3.bf16.msra.mxu1 %v6783_v2  ;;  %5193 = vmatprep.mubr.f32.mxu1 %v7213_v8 }
 0x216   : > { %5640 = vmatprep.subr.bf16.mxu1 %v6789_v52  ;;  %5475 = vmatmul.mubr.f32.gmra.mrb[18].mxu0 %v6462_v29 }
 0x217   : > { %5718 = vmatpush3.bf16.msra.mxu0 %v6783_v2  ;;  %5477 = vmatprep.mubr.f32.mxu0 %v7213_v8 }
 0x218   : > { %5720 = vmatprep.subr.bf16.mxu0 %v6789_v52  ;;  %5194 = vmatmul.mubr.f32.gmra.mrb[4].mxu1 %v7215_v37 }
 0x219   : > { %5642 = vmatpush3.bf16.msra.mxu1 %v6789_v52  ;;  %5196 = vmatprep.mubr.f32.mxu1 %v7216_v38 }
 0x21a   : > { %5644 = vmatprep.subr.bf16.mxu1 %v6797_v60  ;;  %5478 = vmatmul.mubr.f32.gmra.mrb[20].mxu0 %v7215_v37 }
 0x21b   : > { %5722 = vmatpush3.bf16.msra.mxu0 %v6789_v52  ;;  %5480 = vmatprep.mubr.f32.mxu0 %v7216_v38 }
 0x21c   : > { %5724 = vmatprep.subr.bf16.mxu0 %v6797_v60  ;;  %5197 = vmatmul.mubr.f32.gmra.mrb[6].mxu1 %v7218_v40 }
 0x21d   : > { %5646 = vmatpush3.bf16.msra.mxu1 %v6797_v60  ;;  %5199 = vmatprep.mubr.f32.mxu1 %v7219_v4 }
 0x21e   : > { %5648 = vmatprep.subr.bf16.mxu1 %v6793_v44  ;;  %5481 = vmatmul.mubr.f32.gmra.mrb[22].mxu0 %v7218_v40 }
 0x21f   : > { %5726 = vmatpush3.bf16.msra.mxu0 %v6797_v60  ;;  %5483 = vmatprep.mubr.f32.mxu0 %v7219_v4 }
 0x220   : > { %5200 = vmatmul.mubr.f32.gmra.mrb[8].mxu1 %v7220_v17 }
 0x221   : > { %5202 = vmatprep.mubr.f32.mxu1 %v7221_v18 }
 0x222   : > { %5484 = vmatmul.mubr.f32.gmra.mrb[24].mxu0 %v7220_v17 }
 0x223   : > { %5486 = vmatprep.mubr.f32.mxu0 %v7221_v18 }
 0x224   : > { %5203 = vmatmul.mubr.f32.gmra.mrb[10].mxu1 %v7222_v22 }
 0x225   : > { %5205 = vmatprep.mubr.f32.mxu1 %v7223_v30 }
 0x226   : > { %5487 = vmatmul.mubr.f32.gmra.mrb[26].mxu0 %v7222_v22 }
 0x227   : > { %5489 = vmatprep.mubr.f32.mxu0 %v7223_v30 }
 0x228   : > { %5206 = vmatmul.mubr.f32.gmra.mrb[12].mxu1 %v7224_v46 }
 0x229   : > { %5208 = vmatprep.mubr.f32.mxu1 %v7225_v24 }
 0x22a   : > { %5490 = vmatmul.mubr.f32.gmra.mrb[28].mxu0 %v7224_v46 }
 0x22b   : > { %5492 = vmatprep.mubr.f32.mxu0 %v7225_v24 }
 0x22c   : > { %5209 = vmatmul.mubr.f32.gmra.mrb[14].mxu1 %v7226_v50 }
 0x22d   : > { %5311 = vmatprep.mubr.f32.mxu1 %v7227_v1 }
 0x22e   : > { %5493 = vmatmul.mubr.f32.gmra.mrb[30].mxu0 %v7226_v50 }
 0x22f   : > { %5511 = vmatprep.mubr.f32.mxu0 %v6426_v20 }
 0x230   : > { %5312 = vmatmul.mubr.f32.vlgmr.msra.gmra.mrb[16].mxu1 %v7228_v49 }
 0x231   : > { %5650 = vmatpush3.bf16.msra.mxu1 %v6793_v44  ;;  %5314 = vmatprep.mubr.f32.mxu1 %v7229_v54  ;;  %v7233_v44 = vld [vmem:[#allocation25_spill] sm:$0xff] }
 0x232   : > { %5652 = vmatprep.subr.bf16.mxu1 %v6801_v13  ;;  %5512 = vmatmul.mubr.f32.vlgmr.msra.gmra.mrb[16].mxu0 %v6458_v27 }
 0x233   : > { %5514 = vmatprep.mubr.f32.mxu0 %v6460_v28 }
 0x234   : > { %5315 = vmatmul.mubr.f32.gmra.mrb[18].mxu1 %v7230_v59 }
 0x235   : > { %5654 = vmatpush3.bf16.msra.mxu1 %v6801_v13  ;;  %5317 = vmatprep.mubr.f32.mxu1 %v7231_v11 }
 0x236   : > { %5656 = vmatprep.subr.bf16.mxu1 %v6807_v23  ;;  %5515 = vmatmul.mubr.f32.gmra.mrb[18].mxu0 %v6462_v29 }
 0x238   : > { %5318 = vmatmul.mubr.f32.gmra.mrb[20].mxu1 %v7232_v10 }
 0x239   : > { %5658 = vmatpush3.bf16.msra.mxu1 %v6807_v23  ;;  %5320 = vmatprep.mubr.f32.mxu1 %v7233_v44 }
 0x23a   : > { %5660 = vmatprep.subr.bf16.mxu1 %v6815_v21 }
 0x23c   : > { %5321 = vmatmul.mubr.f32.gmra.mrb[22].mxu1 %v7234_v34 }
 0x23d   : > { %5662 = vmatpush3.bf16.msra.mxu1 %v6815_v21  ;;  %5323 = vmatprep.mubr.f32.mxu1 %v7235_v25 }
 0x23e   : > { %5727 = vmatprep.subr.bf16.mxu1 %v6778_v16 }
 0x240   : > { %5324 = vmatmul.mubr.f32.gmra.mrb[24].mxu1 %v7236_v19 }
 0x241   : > { %5326 = vmatprep.mubr.f32.mxu1 %v7237_v42 }
 0x244   : > { %5327 = vmatmul.mubr.f32.gmra.mrb[26].mxu1 %v7238_v61 }
 0x245   : > { %5329 = vmatprep.mubr.f32.mxu1 %v7239_v7 }
 0x248   : > { %5330 = vmatmul.mubr.f32.gmra.mrb[28].mxu1 %v7240_v12 }
 0x249   : > { %5332 = vmatprep.mubr.f32.mxu1 %v7241_v45 }
 0x24c   : > { %5333 = vmatmul.mubr.f32.gmra.mrb[30].mxu1 %v7242_v36 }
 0x24d   : > { %5351 = vmatprep.mubr.f32.mxu1 %v6426_v20 }
 0x250   : > { %5352 = vmatmul.mubr.f32.vlgmr.msra.gmra.mrb[16].mxu1 %v6458_v27 }
 0x251   : > { %5731 = vmatpush3.bf16.msra.mxu1 %v6778_v16  ;;  %5354 = vmatprep.mubr.f32.mxu1 %v6460_v28 }
 0x252   : > { %5728 = vmatprep.subr.bf16.mxu1 %v6783_v2 }
 0x254   : > { %5355 = vmatmul.mubr.f32.gmra.mrb[18].mxu1 %v6462_v29 }
 0x255   : > { %5732 = vmatpush3.bf16.msra.mxu1 %v6783_v2  ;;  %5357 = vmatprep.mubr.f32.mxu1 %v7213_v8 }
 0x256   : > { %5729 = vmatprep.subr.bf16.mxu1 %v6789_v52 }
 0x258   : > { %5358 = vmatmul.mubr.f32.gmra.mrb[20].mxu1 %v7215_v37 }
 0x259   : > { %5733 = vmatpush3.bf16.msra.mxu1 %v6789_v52  ;;  %5360 = vmatprep.mubr.f32.mxu1 %v7216_v38 }
 0x25a   : > { %5730 = vmatprep.subr.bf16.mxu1 %v6797_v60 }
 0x25c   : > { %5361 = vmatmul.mubr.f32.gmra.mrb[22].mxu1 %v7218_v40 }
 0x25d   : > { %5734 = vmatpush3.bf16.msra.mxu1 %v6797_v60  ;;  %5363 = vmatprep.mubr.f32.mxu1 %v7219_v4 }
 0x260   : > { %5364 = vmatmul.mubr.f32.gmra.mrb[24].mxu1 %v7220_v17 }
 0x261   : > { %5366 = vmatprep.mubr.f32.mxu1 %v7221_v18 }
 0x264   : > { %5367 = vmatmul.mubr.f32.gmra.mrb[26].mxu1 %v7222_v22 }
 0x265   : > { %5369 = vmatprep.mubr.f32.mxu1 %v7223_v30 }
 0x268   : > { %5370 = vmatmul.mubr.f32.gmra.mrb[28].mxu1 %v7224_v46 }
 0x269   : > { %5372 = vmatprep.mubr.f32.mxu1 %v7225_v24 }
 0x26c   : > { %5373 = vmatmul.mubr.f32.gmra.mrb[30].mxu1 %v7226_v50 }
 0x26d   : > { %5517 = vmatprep.mubr.f32.mxu1 %v7213_v8 }
 0x270   : > { %5518 = vmatmul.mubr.f32.vlgmr.msra.gmra.mrb[32].mxu1 %v7215_v37 }
 0x271   : > { %5520 = vmatprep.mubr.f32.mxu1 %v7216_v38 }
 0x274   : > { %5521 = vmatmul.mubr.f32.gmra.mrb[34].mxu1 %v7218_v40 }
 0x275   : > { %5523 = vmatprep.mubr.f32.mxu1 %v7219_v4 }
 0x278   : > { %5524 = vmatmul.mubr.f32.gmra.mrb[36].mxu1 %v7220_v17 }
 0x279   : > { %5526 = vmatprep.mubr.f32.mxu1 %v7221_v18 }
 0x27c   : > { %5527 = vmatmul.mubr.f32.gmra.mrb[38].mxu1 %v7222_v22 }
 0x27d   : > { %5529 = vmatprep.mubr.f32.mxu1 %v7223_v30 }
 0x280   : > { %5530 = vmatmul.mubr.f32.gmra.mrb[40].mxu1 %v7224_v46 }
 0x281   : > { %5532 = vmatprep.mubr.f32.mxu1 %v7225_v24 }
 0x284   : > { %5533 = vmatmul.mubr.f32.gmra.mrb[42].mxu1 %v7226_v50 }
 0x2e3   : > { %v5189_v20 = vpop.f32.mrb[0].mxu1 }
 0x2e4   : > { %v2347_v27 = vmax.f32 %v5189_v20, 0.0  ;;  %v2252_v28 = vpop.f32.mrb[1].mxu1 }
 0x2e5   : > { %v2346_v29 = vmax.f32 %v2252_v28, 0.0 }
 0x2e6   : > { %2363 = vst [vmem:[%s7017_s11 + $0x8] sm:$0xff] %v2347_v27 }
 0x2e7   : > { %2362 = vst [vmem:[%s7017_s11] sm:$0xff] %v2346_v29  ;;  %v5192_v16 = vpop.f32.mrb[2].mxu1 }
 0x2e8   : > { %v2349_v2 = vmax.f32 %v5192_v16, 0.0  ;;  %v2264_v52 = vpop.f32.mrb[3].mxu1 }
 0x2e9   : > { %v2348_v55 = vmax.f32 %v2264_v52, 0.0 }
 0x2ea   : > { %2365 = vst [vmem:[%s7017_s11 + $0x18] sm:$0xff] %v2349_v2 }
 0x2eb   : > { %2364 = vst [vmem:[%s7017_s11 + $0x10] sm:$0xff] %v2348_v55  ;;  %v5195_v47 = vpop.f32.mrb[4].mxu1 }
 0x2ec   : > { %v2351_v57 = vmax.f32 %v5195_v47, 0.0  ;;  %v2276_v58 = vpop.f32.mrb[5].mxu1 }
 0x2ed   : > { %v2350_v60 = vmax.f32 %v2276_v58, 0.0  ;;  %v7023_v14 = vpop.f32.mrb[20].mxu0 }
 0x2ee   : > { %2367 = vst [vmem:[%s7017_s11 + $0x28] sm:$0xff] %v2351_v57  ;;  %v7026_v15 = vpop.f32.mrb[21].mxu0 }
 0x2ef   : > { %2366 = vst [vmem:[%s7017_s11 + $0x20] sm:$0xff] %v2350_v60  ;;  %v5198_v26 = vpop.f32.mrb[6].mxu1 }
 0x2f0   : > { %v2353_v43 = vmax.f32 %v5198_v26, 0.0  ;;  %v2288_v13 = vpop.f32.mrb[7].mxu1 }
 0x2f1   : > { %v2352_v39 = vmax.f32 %v2288_v13, 0.0  ;;  %v5482_v51 = vpop.f32.mrb[22].mxu0 }
 0x2f2   : > { %2369 = vst [vmem:[%s7017_s11 + $0x38] sm:$0xff] %v2353_v43  ;;  %v4095_v3 = vpop.f32.mrb[23].mxu0 }
 0x2f3   : > { %2368 = vst [vmem:[%s7017_s11 + $0x30] sm:$0xff] %v2352_v39  ;;  %v5201_v6 = vpop.f32.mrb[8].mxu1 }
 0x2f4   : > { %v2355_v48 = vmax.f32 %v5201_v6, 0.0  ;;  %v2300_v0 = vpop.f32.mrb[9].mxu1 }
 0x2f5   : > { %v2354_v23 = vmax.f32 %v2300_v0, 0.0  ;;  %v5485_v9 = vpop.f32.mrb[24].mxu0 }
 0x2f6   : > { %2371 = vst [vmem:[%s7017_s11 + $0x48] sm:$0xff] %v2355_v48  ;;  %v4107_v41 = vpop.f32.mrb[25].mxu0 }
 0x2f7   : > { %2370 = vst [vmem:[%s7017_s11 + $0x40] sm:$0xff] %v2354_v23  ;;  %v5204_v35 = vpop.f32.mrb[10].mxu1 }
 0x2f8   : > { %v2357_v21 = vmax.f32 %v5204_v35, 0.0  ;;  %v2312_v31 = vpop.f32.mrb[11].mxu1 }
 0x2f9   : > { %v2356_v32 = vmax.f32 %v2312_v31, 0.0  ;;  %v5488_v33 = vpop.f32.mrb[26].mxu0 }
 0x2fa   : > { %2373 = vst [vmem:[%s7017_s11 + $0x58] sm:$0xff] %v2357_v21  ;;  %v4119_v53 = vpop.f32.mrb[27].mxu0 }
 0x2fb   : > { %2372 = vst [vmem:[%s7017_s11 + $0x50] sm:$0xff] %v2356_v32  ;;  %v5207_v56 = vpop.f32.mrb[12].mxu1 }
 0x2fc   : > { %v2359_v63 = vmax.f32 %v5207_v56, 0.0  ;;  %v2324_v8 = vpop.f32.mrb[13].mxu1 }
 0x2fd   : > { %v2358_v62 = vmax.f32 %v2324_v8, 0.0  ;;  %v5491_v37 = vpop.f32.mrb[28].mxu0 }
 0x2fe   : > { %2375 = vst [vmem:[%s7017_s11 + $0x68] sm:$0xff] %v2359_v63  ;;  %v4131_v38 = vpop.f32.mrb[29].mxu0 }
 0x2ff   : > { %2374 = vst [vmem:[%s7017_s11 + $0x60] sm:$0xff] %v2358_v62  ;;  %v5210_v5 = vpop.f32.mrb[14].mxu1 }
 0x300   : > { %v2361_v40 = vmax.f32 %v5210_v5, 0.0  ;;  %v2336_v4 = vpop.f32.mrb[15].mxu1 }
 0x301   : > { %v2360_v17 = vmax.f32 %v2336_v4, 0.0  ;;  %v5494_v18 = vpop.f32.mrb[30].mxu0 }
 0x302   : > { %2377 = vst [vmem:[%s7017_s11 + $0x78] sm:$0xff] %v2361_v40  ;;  %v4143_v22 = vpop.f32.mrb[31].mxu0 }
 0x303   : > { %2376 = vst [vmem:[%s7017_s11 + $0x70] sm:$0xff] %v2360_v17 }
 0x305   : > { %v5513_v30 = vpop.f32.mrb[16].mxu0 }
 0x306   : > { %v4228_v46 = vpop.f32.mrb[17].mxu0 }
 0x309   : > { %v5516_v24 = vpop.f32.mrb[18].mxu0 }
 0x30a   : > { %v4240_v50 = vpop.f32.mrb[19].mxu0 }
 0x323   : > { %v5353_v1 = vpop.f32.mrb[16].mxu1 }
 0x324   : > { %v5735_v49 = vadd.f32 %v5513_v30, %v5353_v1  ;;  %v3480_v54 = vpop.f32.mrb[17].mxu1 }
 0x325   : > { %v5736_v59 = vadd.f32 %v4228_v46, %v3480_v54 }
 0x326   : > { %v4323_v11 = vmax.f32 %v5735_v49, 0.0 }
 0x327   : > { %v4322_v10 = vmax.f32 %v5736_v59, 0.0  ;;  %v5356_v44 = vpop.f32.mrb[18].mxu1 }
 0x328   : > { %4472 = vst [vmem:[%s7017_s11 + $0x88] sm:$0xff] %v4323_v11  ;;  %v5737_v34 = vadd.f32 %v5516_v24, %v5356_v44  ;;  %v3492_v25 = vpop.f32.mrb[19].mxu1 }
 0x329   : > { %4471 = vst [vmem:[%s7017_s11 + $0x80] sm:$0xff] %v4322_v10  ;;  %v5738_v19 = vadd.f32 %v4240_v50, %v3492_v25 }
 0x32a   : > { %v4325_v42 = vmax.f32 %v5737_v34, 0.0 }
 0x32b   : > { %v4324_v61 = vmax.f32 %v5738_v19, 0.0  ;;  %v5359_v7 = vpop.f32.mrb[20].mxu1 }
 0x32c   : > { %4474 = vst [vmem:[%s7017_s11 + $0x98] sm:$0xff] %v4325_v42  ;;  %v5739_v12 = vadd.f32 %v7023_v14, %v5359_v7  ;;  %v3504_v45 = vpop.f32.mrb[21].mxu1 }
 0x32d   : > { %4473 = vst [vmem:[%s7017_s11 + $0x90] sm:$0xff] %v4324_v61  ;;  %v5741_v36 = vadd.f32 %v7026_v15, %v3504_v45 }
 0x32f   : > { %v5362_v20 = vpop.f32.mrb[22].mxu1 }
 0x330   : > { %v5743_v27 = vadd.f32 %v5482_v51, %v5362_v20  ;;  %v3516_v28 = vpop.f32.mrb[23].mxu1 }
 0x331   : > { %v5745_v29 = vadd.f32 %v4095_v3, %v3516_v28 }
 0x333   : > { %v5365_v16 = vpop.f32.mrb[24].mxu1 }
 0x334   : > { %v5747_v2 = vadd.f32 %v5485_v9, %v5365_v16  ;;  %v3528_v52 = vpop.f32.mrb[25].mxu1 }
 0x335   : > { %v5749_v55 = vadd.f32 %v4107_v41, %v3528_v52 }
 0x337   : > { %v5368_v47 = vpop.f32.mrb[26].mxu1 }
 0x338   : > { %v5751_v57 = vadd.f32 %v5488_v33, %v5368_v47  ;;  %v3540_v58 = vpop.f32.mrb[27].mxu1 }
 0x339   : > { %v5753_v60 = vadd.f32 %v4119_v53, %v3540_v58 }
 0x33b   : > { %v5371_v26 = vpop.f32.mrb[28].mxu1 }
 0x33c   : > { %v5755_v43 = vadd.f32 %v5491_v37, %v5371_v26  ;;  %v3552_v14 = vpop.f32.mrb[29].mxu1 }
 0x33d   : > { %v5757_v13 = vadd.f32 %v4131_v38, %v3552_v14 }
 0x33f   : > { %v5374_v39 = vpop.f32.mrb[30].mxu1 }
 0x340   : > { %v5759_v15 = vadd.f32 %v5494_v18, %v5374_v39  ;;  %v3564_v6 = vpop.f32.mrb[31].mxu1 }
 0x341   : > { %v5761_v51 = vadd.f32 %v4143_v22, %v3564_v6 }
 0x343   : > { %v5519_v3 = vpop.f32.mrb[32].mxu1 }
 0x344   : > { %v5740_v48 = vadd.f32 %v5739_v12, %v5519_v3  ;;  %v4252_v0 = vpop.f32.mrb[33].mxu1 }
 0x345   : > { %v5742_v23 = vadd.f32 %v5741_v36, %v4252_v0 }
 0x346   : > { %v4327_v9 = vmax.f32 %v5740_v48, 0.0 }
 0x347   : > { %v4326_v41 = vmax.f32 %v5742_v23, 0.0  ;;  %v5522_v35 = vpop.f32.mrb[34].mxu1 }
 0x348   : > { %4476 = vst [vmem:[%s7017_s11 + $0xa8] sm:$0xff] %v4327_v9  ;;  %v5744_v21 = vadd.f32 %v5743_v27, %v5522_v35  ;;  %v4264_v31 = vpop.f32.mrb[35].mxu1 }
 0x349   : > { %4475 = vst [vmem:[%s7017_s11 + $0xa0] sm:$0xff] %v4326_v41  ;;  %v5746_v32 = vadd.f32 %v5745_v29, %v4264_v31 }
 0x34a   : > { %v4329_v33 = vmax.f32 %v5744_v21, 0.0 }
 0x34b   : > { %v4328_v53 = vmax.f32 %v5746_v32, 0.0  ;;  %v5525_v56 = vpop.f32.mrb[36].mxu1 }
 0x34c   : > { %4478 = vst [vmem:[%s7017_s11 + $0xb8] sm:$0xff] %v4329_v33  ;;  %v5748_v63 = vadd.f32 %v5747_v2, %v5525_v56  ;;  %v4276_v8 = vpop.f32.mrb[37].mxu1 }
 0x34d   : > { %4477 = vst [vmem:[%s7017_s11 + $0xb0] sm:$0xff] %v4328_v53  ;;  %v5750_v62 = vadd.f32 %v5749_v55, %v4276_v8 }
 0x34e   : > { %v4331_v37 = vmax.f32 %v5748_v63, 0.0 }
 0x34f   : > { %v4330_v38 = vmax.f32 %v5750_v62, 0.0  ;;  %v5528_v5 = vpop.f32.mrb[38].mxu1 }
 0x350   : > { %4480 = vst [vmem:[%s7017_s11 + $0xc8] sm:$0xff] %v4331_v37  ;;  %v5752_v40 = vadd.f32 %v5751_v57, %v5528_v5  ;;  %v4288_v4 = vpop.f32.mrb[39].mxu1 }
 0x351   : > { %4479 = vst [vmem:[%s7017_s11 + $0xc0] sm:$0xff] %v4330_v38  ;;  %v5754_v17 = vadd.f32 %v5753_v60, %v4288_v4 }
 0x352   : > { %v4333_v18 = vmax.f32 %v5752_v40, 0.0 }
 0x353   : > { %v4332_v22 = vmax.f32 %v5754_v17, 0.0  ;;  %v5531_v30 = vpop.f32.mrb[40].mxu1 }
 0x354   : > { %4482 = vst [vmem:[%s7017_s11 + $0xd8] sm:$0xff] %v4333_v18  ;;  %v5756_v46 = vadd.f32 %v5755_v43, %v5531_v30  ;;  %v4300_v24 = vpop.f32.mrb[41].mxu1 }
 0x355   : > { %4481 = vst [vmem:[%s7017_s11 + $0xd0] sm:$0xff] %v4332_v22  ;;  %v5758_v50 = vadd.f32 %v5757_v13, %v4300_v24 }
 0x356   : > { %v4335_v1 = vmax.f32 %v5756_v46, 0.0 }
 0x357   : > { %v4334_v49 = vmax.f32 %v5758_v50, 0.0  ;;  %v5534_v54 = vpop.f32.mrb[42].mxu1 }
 0x358   : > { %4484 = vst [vmem:[%s7017_s11 + $0xe8] sm:$0xff] %v4335_v1  ;;  %v5760_v59 = vadd.f32 %v5759_v15, %v5534_v54  ;;  %v4312_v11 = vpop.f32.mrb[43].mxu1 }
 0x359   : > { %4483 = vst [vmem:[%s7017_s11 + $0xe0] sm:$0xff] %v4334_v49  ;;  %v5762_v10 = vadd.f32 %v5761_v51, %v4312_v11 }
 0x35a   : > { %v4337_v44 = vmax.f32 %v5760_v59, 0.0 }
 0x35b   : > { %v4336_v34 = vmax.f32 %v5762_v10, 0.0 }
 0x35c   : > { %4486 = vst [vmem:[%s7017_s11 + $0xf8] sm:$0xff] %v4337_v44 }
 0x35d   : > { %4485 = vst [vmem:[%s7017_s11 + $0xf0] sm:$0xff] %v4336_v34 }
 0x35e   : > { %6030 = shalt.err (!%p6027_p7)
}
 0x35f   : > { %s6031_s17 = scalar_lea.hbm %s7060_s23, 4096  ;;  %s6035_s9 = scalar_lea.hbm %s7113_s5, 8192 }
 0x360   : > { %p6032_p10 = scmp.ne.s32.totalorder %s7060_s23, %s6031_s17  ;;  %p6036_p13 = scmp.lt.u32.totalorder %s7060_s23, %s7113_s5 }
 0x361   : > { %p6037_p0 = scmp.lt.u32.totalorder %s6035_s9, %s6031_s17  ;;  %p6039_p2 = scmp.lt.u32.totalorder %s6031_s17, %s7060_s23 }
 0x362   : > { %p6033_p11 = pnand %p6032_p10, %p6154_p6 }
 0x363   : > { %p6038_p1 = por %p6037_p0, %p6036_p13 }
 0x364   : > { %p6034_p12 = pneg %p6033_p11 }
 0x365   : > { %p6040_p3 = por %p6039_p2, %p6038_p1 }
 0x367   : > { %p6041_p4 = pnand %p6040_p3, %p6034_p12 }
 0x369   : > { %6044 = shalt.err (!%p6041_p4)
}
 0x36a   : > { %s6082_s13 = smov 128   ;;  %s6083_s15 = smov 256  }
 0x36b   : > { %s6084_s16 = smov 8  }
 0x36c   : > { %5975 = dma.vmem_to_hbm [thread:$0]  (%p6154_p6), %s7062_s14, 4096, %s7060_s23, %s4356_s22, %s6082_s13, %s6083_s15, %s6084_s16  }
 0x36d PF: > { %s4383_s25 = sand.u32 1, %s6067_s18   ;;  %p5978_p5 = pnand %p4462_p9, %p6158_p8 }
 0x36e   : > { %s4384_s26 = scalar_lea.sflag [#allocation4], %s4383_s25 }
 0x36f   : > { %6062 = dma.done.wait (!%p5978_p5), %s4384_s26, 4096  }
 0x370   : > { %6064 = vsyncadd (!%p5978_p5), %s4384_s26, 4294963200  ;;  %p15_p7 = scmp.ge.s32.totalorder %s6140_s24, 4   ;;  %s7243_s18 = smov %s6071_s19 }
 0x371   : > { %s7244_s19 = smov %s6075_s20  ;;  %s7245_s20 = smov %s6152_s27 }
 0x372   : > { %s7246_s21 = smov %s6140_s24  ;;  %17 = sbr.rel (!%p15_p7) target bundleno = 3 (0x3), region = 129 }
 0x379   :  { %4389 = vsyncpa [#allocation4], 1 }
 0x37a   :  { %4391 = vsyncpa [#allocation4 + $0x1], 1 }

</bundles_post_ra>
